<compile_context>
chip_gen: v6e
topology: v6e:2x2x1
jax: 0.10.0
libtpu: 0.0.40
codegen_flags: <defaults>
</compile_context>

<pallas_src>
import functools

import numpy as np
import jax
import jax.numpy as jnp
from jax import lax
from jax.experimental import pallas as pl
from jax.experimental.pallas import tpu as pltpu


def _round_up(x, m):
    return ((x + m - 1) // m) * m


# ---------------------------------------------------------------------------
# Fused per-image kernel: IoU + SSD match + encode + loss reductions
# ---------------------------------------------------------------------------
def _criterion_kernel(truths_ref, table_ref, out_ref, *, n_lanes, gp, threshold):
    """Grid axis 0 = image index.

    truths_ref: [Gp, 8]  -- cols 0..3 GT corners (x1,y1,x2,y2), col 4 valid flag.
    table_ref : [11, Np] -- shared lane-dense proposal table:
                rows 0..3 loc preds, 4..5 class logits, 6..9 anchor corners, 10 batch idx.
    out_ref   : [8, 128] -- row0 smoothL1 sum (positives), row1 CE sum, row2 #pos, row3 #proposals.
    """
    img = pl.program_id(0).astype(jnp.float32)

    # ---- lane-dense proposal slab (static slices of one VMEM ref are free) ----
    lx = table_ref[0:1, :]
    ly = table_ref[1:2, :]
    lw = table_ref[2:3, :]
    lh = table_ref[3:4, :]
    s0 = table_ref[4:5, :]
    s1 = table_ref[5:6, :]
    px1 = table_ref[6:7, :]
    py1 = table_ref[7:8, :]
    px2 = table_ref[8:9, :]
    py2 = table_ref[9:10, :]
    bidx = table_ref[10:11, :]
    pmask = (bidx == img).astype(jnp.float32)                       # [1, Np]

    # ---- GT boxes on the sublane axis ----
    t = truths_ref[...]                                             # [Gp, 8]
    tx1 = t[:, 0:1]
    ty1 = t[:, 1:2]
    tx2 = t[:, 2:3]
    ty2 = t[:, 3:4]
    gvalid = t[:, 4:5]                                              # [Gp, 1]

    # ---- pairwise IoU [Gp, Np] (broadcast GT columns against prior lanes) ----
    area_t = (tx2 - tx1) * (ty2 - ty1)                              # [Gp, 1]
    area_p = (px2 - px1) * (py2 - py1)                              # [1, Np]
    iw = jnp.maximum(jnp.minimum(tx2, px2) - jnp.maximum(tx1, px1), 0.0)
    ih = jnp.maximum(jnp.minimum(ty2, py2) - jnp.maximum(ty1, py1), 0.0)
    inter = iw * ih                                                 # [Gp, Np]
    union = jnp.maximum(area_t + area_p - inter, 1e-10)
    iou = inter * pl.reciprocal(union, approx=True)                 # EUP; only feeds comparisons

    valid2d = (gvalid * pmask) > 0.5                                # [Gp, Np]
    iou_m = jnp.where(valid2d, iou, -1.0)

    gidx = lax.broadcasted_iota(jnp.int32, (gp, n_lanes), 0).astype(jnp.float32)
    lidx = lax.broadcasted_iota(jnp.int32, (gp, n_lanes), 1).astype(jnp.float32)

    # per-prior best GT (sublane reduction)
    bt_ov = jnp.max(iou_m, axis=0, keepdims=True)                   # [1, Np]
    bt_idx = jnp.min(jnp.where(iou_m == bt_ov, gidx, float(gp)),
                     axis=0, keepdims=True)                         # [1, Np]

    # per-GT best prior (lane reduction) + SSD bipartite force-match
    bp_ov = jnp.max(iou_m, axis=1, keepdims=True)                   # [Gp, 1]
    bp_idx = jnp.min(jnp.where(iou_m == bp_ov, lidx, float(n_lanes)),
                     axis=1, keepdims=True)                         # [Gp, 1]
    can_force = (gvalid > 0.5) & (bp_ov >= 0.0)
    forced = (bp_idx == lidx) & can_force                           # [Gp, Np]
    forced_any = jnp.max(forced.astype(jnp.float32), axis=0, keepdims=True) > 0.5
    forced_gt = jnp.max(jnp.where(forced, gidx, -1.0), axis=0, keepdims=True)
    bt_ov = jnp.where(forced_any, 2.0, bt_ov)
    bt_idx = jnp.where(forced_any, forced_gt, bt_idx)

    # gather matched GT box per prior via a one-hot sublane reduction (Gp is tiny)
    onehot = (gidx == bt_idx).astype(jnp.float32)                   # [Gp, Np]
    mx1 = jnp.sum(onehot * tx1, axis=0, keepdims=True)
    my1 = jnp.sum(onehot * ty1, axis=0, keepdims=True)
    mx2 = jnp.sum(onehot * tx2, axis=0, keepdims=True)
    my2 = jnp.sum(onehot * ty2, axis=0, keepdims=True)

    # ---- encode (SSD center-form offsets, variances 0.1 / 0.2) ----
    # TODO(synk): exact SRN `match`/`encode` helpers are not in the module spec;
    # standard SSD matching + encoding is used here.
    p_w = jnp.maximum(px2 - px1, 1e-6)
    p_h = jnp.maximum(py2 - py1, 1e-6)
    p_cx = (px1 + px2) * 0.5
    p_cy = (py1 + py2) * 0.5
    m_w = jnp.maximum(mx2 - mx1, 1e-6)   # clamp: padded / unmatched lanes stay finite
    m_h = jnp.maximum(my2 - my1, 1e-6)   # (they are masked out of the loss below)
    g_cx = ((mx1 + mx2) * 0.5 - p_cx) / (0.1 * p_w)
    g_cy = ((my1 + my2) * 0.5 - p_cy) / (0.1 * p_h)
    g_w = jnp.log(m_w / p_w) / 0.2
    g_h = jnp.log(m_h / p_h) / 0.2

    conf_tgt = jnp.where(bt_ov >= threshold, 1.0, 0.0) * pmask      # [1, Np]
    pos = conf_tgt

    # ---- smooth-L1 (beta=1, reduction='sum') over positive proposals ----
    def _sl1(pred_row, tgt_row):
        d = jnp.abs(pred_row - tgt_row)
        return jnp.sum(jnp.where(d < 1.0, 0.5 * d * d, d - 0.5) * pos)

    sl1_sum = _sl1(lx, g_cx) + _sl1(ly, g_cy) + _sl1(lw, g_w) + _sl1(lh, g_h)

    # ---- 2-class cross-entropy, softplus form: CE = softplus(s_other - s_target) ----
    z = jnp.where(conf_tgt > 0.5, s0 - s1, s1 - s0)
    ce = jnp.maximum(z, 0.0) + jnp.log(1.0 + jnp.exp(-jnp.abs(z)))
    ce_sum = jnp.sum(ce * pmask)

    npos = jnp.sum(pos)
    pcnt = jnp.sum(pmask)

    row = lax.broadcasted_iota(jnp.int32, (8, 128), 0)
    out_ref[...] = jnp.where(row == 0, sl1_sum,
                   jnp.where(row == 1, ce_sum,
                   jnp.where(row == 2, npos,
                   jnp.where(row == 3, pcnt, 0.0))))


# ---------------------------------------------------------------------------
# Device-side wrapper (fully jittable, no host syncs)
# ---------------------------------------------------------------------------
@functools.partial(jax.jit, static_argnames=("overlap_thresh",))
def _srn_criterion_device(predictions, truths_padded, *, overlap_thresh):
    predictions = predictions.astype(jnp.float32)
    n = predictions.shape[0]
    b, gp, _ = truths_padded.shape
    n_lanes = max(128, _round_up(n, 128))

    # lane-dense proposal table [11, Np]: rows = 4 loc, 2 conf, 4 anchors, 1 batch idx
    body = jnp.concatenate([predictions[:, 1:5], predictions[:, 5:7],
                            predictions[:, -4:], predictions[:, 0:1]], axis=1)  # [N, 11]
    table = (jnp.zeros((11, n_lanes), jnp.float32)
             .at[10, :].set(-1.0)            # padded lanes belong to no image
             .at[:, :n].set(body.T))

    kernel = functools.partial(_criterion_kernel, n_lanes=n_lanes, gp=gp,
                               threshold=float(overlap_thresh))
    outs = pl.pallas_call(
        kernel,
        out_shape=jax.ShapeDtypeStruct((b, 8, 128), jnp.float32),
        grid=(b,),
        in_specs=[
            pl.BlockSpec((None, gp, 8), lambda i: (i, 0, 0)),   # per-image GT block
            pl.BlockSpec((11, n_lanes), lambda i: (0, 0)),      # shared proposal slab (resident)
        ],
        out_specs=pl.BlockSpec((None, 8, 128), lambda i: (i, 0, 0)),
        compiler_params=pltpu.CompilerParams(
            dimension_semantics=("parallel",)),                 # images shard across TCs on v7x
    )(truths_padded, table)

    sl1_sum = outs[:, 0, 0]
    ce_sum = outs[:, 1, 0]
    npos = outs[:, 2, 0]
    pcnt = outs[:, 3, 0]

    loss_l = jnp.sum(sl1_sum) / jnp.sum(npos)         # Σ smoothL1 / Σ positives   (== /cnt_l)
    loss_c = jnp.sum(ce_sum / pcnt) / jnp.sum(pcnt)   # Σ per-image CE mean / Σ proposals (== /cnt_c)
    return loss_l + loss_c


def srn_criterion(predictions, targets, overlap_thresh=0.5):
    """predictions: [N, 11] rows = (batch_idx, 4 loc offsets, 2 class scores, 4 anchor corners).
    targets: python list (len = batch) of [G_i, 4] ground-truth boxes (corner form)."""
    b = len(targets)
    gmax = max(int(np.asarray(t).shape[0]) for t in targets)
    gp = max(8, _round_up(gmax, 8))
    truths_padded = np.zeros((b, gp, 8), np.float32)   # cols 0..3 coords, col 4 valid flag
    for i, t in enumerate(targets):
        ti = np.asarray(t, np.float32)
        g = ti.shape[0]
        truths_padded[i, :g, :4] = ti
        truths_padded[i, :g, 4] = 1.0
    return _srn_criterion_device(jnp.asarray(predictions, jnp.float32),
                                 jnp.asarray(truths_padded),
                                 overlap_thresh=float(overlap_thresh))


if __name__ == "__main__":
    key = jax.random.PRNGKey(0)
    B, P_PER_IMG = 2, 200
    N = B * P_PER_IMG
    k1, k2, k3, k4, k5 = jax.random.split(key, 5)

    # synthetic anchors (corner form) + predicted loc offsets + class logits
    cxcy = jax.random.uniform(k1, (N, 2), minval=0.2, maxval=0.8)
    wh = jax.random.uniform(k2, (N, 2), minval=0.08, maxval=0.3)
    anchors = jnp.concatenate([cxcy - wh / 2, cxcy + wh / 2], axis=1)
    loc_pred = 0.1 * jax.random.normal(k3, (N, 4))
    conf_pred = jax.random.normal(k4, (N, 2))
    bidx_col = jnp.repeat(jnp.arange(B, dtype=jnp.float32), P_PER_IMG)[:, None]
    predictions = jnp.concatenate([bidx_col, loc_pred, conf_pred, anchors], axis=1)  # [N, 11]

    # ragged per-image ground-truth boxes (corner form)
    gt_keys = jax.random.split(k5, B)
    targets = []
    for b_idx, ng in enumerate([3, 4]):
        gk1, gk2 = jax.random.split(gt_keys[b_idx])
        gcx = jax.random.uniform(gk1, (ng, 2), minval=0.25, maxval=0.75)
        gwh = jax.random.uniform(gk2, (ng, 2), minval=0.1, maxval=0.3)
        targets.append(np.asarray(jnp.concatenate([gcx - gwh / 2, gcx + gwh / 2], axis=1)))

    loss = srn_criterion(predictions, targets, overlap_thresh=0.5)
    loss = jax.block_until_ready(loss)
    assert np.isfinite(float(loss)), f"non-finite loss: {loss}"
    print("KERNEL_OK")
</pallas_src>

<mosaic_0001>
module attributes {stable_mosaic.version = 11 : i64} {
  func.func @_criterion_kernel(%arg0: i32, %arg1: memref<1x8x8xf32, #tpu.memory_space<vmem>>, %arg2: memref<11x512xf32, #tpu.memory_space<vmem>>, %arg3: memref<1x8x128xf32, #tpu.memory_space<vmem>>) attributes {dimension_semantics = [#tpu.dimension_semantics<parallel>], iteration_bounds = array<i64: 2>, scalar_prefetch = 0 : i64, scratch_operands = 0 : i64, tpu.core_type = #tpu.core_type<tc>, window_params = [{transform_indices = @transform_0, window_bounds = array<i64: 1, 8, 8>}, {pipeline_mode = #tpu.pipeline_mode<synchronous>, transform_indices = @transform_1, window_bounds = array<i64: 11, 512>}, {transform_indices = @transform_2, window_bounds = array<i64: 1, 8, 128>}]} {
    %0 = arith.sitofp %arg0 : i32 to f32
    %c0 = arith.constant 0 : index
    %c0_0 = arith.constant 0 : index
    %1 = vector.load %arg2[%c0, %c0_0] : memref<11x512xf32, #tpu.memory_space<vmem>>, vector<1x512xf32>
    %c1 = arith.constant 1 : index
    %c0_1 = arith.constant 0 : index
    %2 = vector.load %arg2[%c1, %c0_1] : memref<11x512xf32, #tpu.memory_space<vmem>>, vector<1x512xf32>
    %c2 = arith.constant 2 : index
    %c0_2 = arith.constant 0 : index
    %3 = vector.load %arg2[%c2, %c0_2] : memref<11x512xf32, #tpu.memory_space<vmem>>, vector<1x512xf32>
    %c3 = arith.constant 3 : index
    %c0_3 = arith.constant 0 : index
    %4 = vector.load %arg2[%c3, %c0_3] : memref<11x512xf32, #tpu.memory_space<vmem>>, vector<1x512xf32>
    %c4 = arith.constant 4 : index
    %c0_4 = arith.constant 0 : index
    %5 = vector.load %arg2[%c4, %c0_4] : memref<11x512xf32, #tpu.memory_space<vmem>>, vector<1x512xf32>
    %c5 = arith.constant 5 : index
    %c0_5 = arith.constant 0 : index
    %6 = vector.load %arg2[%c5, %c0_5] : memref<11x512xf32, #tpu.memory_space<vmem>>, vector<1x512xf32>
    %c6 = arith.constant 6 : index
    %c0_6 = arith.constant 0 : index
    %7 = vector.load %arg2[%c6, %c0_6] : memref<11x512xf32, #tpu.memory_space<vmem>>, vector<1x512xf32>
    %c7 = arith.constant 7 : index
    %c0_7 = arith.constant 0 : index
    %8 = vector.load %arg2[%c7, %c0_7] : memref<11x512xf32, #tpu.memory_space<vmem>>, vector<1x512xf32>
    %c8 = arith.constant 8 : index
    %c0_8 = arith.constant 0 : index
    %9 = vector.load %arg2[%c8, %c0_8] : memref<11x512xf32, #tpu.memory_space<vmem>>, vector<1x512xf32>
    %c9 = arith.constant 9 : index
    %c0_9 = arith.constant 0 : index
    %10 = vector.load %arg2[%c9, %c0_9] : memref<11x512xf32, #tpu.memory_space<vmem>>, vector<1x512xf32>
    %c10 = arith.constant 10 : index
    %c0_10 = arith.constant 0 : index
    %11 = vector.load %arg2[%c10, %c0_10] : memref<11x512xf32, #tpu.memory_space<vmem>>, vector<1x512xf32>
    %12 = vector.broadcast %0 : f32 to vector<1x512xf32>
    %13 = arith.cmpf oeq, %11, %12 : vector<1x512xf32>
    %14 = arith.extui %13 : vector<1x512xi1> to vector<1x512xi32>
    %15 = arith.sitofp %14 : vector<1x512xi32> to vector<1x512xf32>
    %c0_11 = arith.constant 0 : index
    %c0_12 = arith.constant 0 : index
    %c0_13 = arith.constant 0 : index
    %16 = vector.load %arg1[%c0_11, %c0_12, %c0_13] : memref<1x8x8xf32, #tpu.memory_space<vmem>>, vector<1x8x8xf32>
    %17 = vector.shape_cast %16 : vector<1x8x8xf32> to vector<8x8xf32>
    %18 = vector.extract_strided_slice %17 {offsets = [0, 0], sizes = [8, 1], strides = [1, 1]} : vector<8x8xf32> to vector<8x1xf32>
    %19 = vector.extract_strided_slice %17 {offsets = [0, 1], sizes = [8, 1], strides = [1, 1]} : vector<8x8xf32> to vector<8x1xf32>
    %20 = vector.extract_strided_slice %17 {offsets = [0, 2], sizes = [8, 1], strides = [1, 1]} : vector<8x8xf32> to vector<8x1xf32>
    %21 = vector.extract_strided_slice %17 {offsets = [0, 3], sizes = [8, 1], strides = [1, 1]} : vector<8x8xf32> to vector<8x1xf32>
    %22 = vector.extract_strided_slice %17 {offsets = [0, 4], sizes = [8, 1], strides = [1, 1]} : vector<8x8xf32> to vector<8x1xf32>
    %23 = arith.subf %20, %18 : vector<8x1xf32>
    %24 = arith.subf %21, %19 : vector<8x1xf32>
    %25 = arith.mulf %23, %24 : vector<8x1xf32>
    %26 = arith.subf %9, %7 : vector<1x512xf32>
    %27 = arith.subf %10, %8 : vector<1x512xf32>
    %28 = arith.mulf %26, %27 : vector<1x512xf32>
    %29 = vector.broadcast %20 : vector<8x1xf32> to vector<8x512xf32>
    %30 = vector.broadcast %9 : vector<1x512xf32> to vector<8x512xf32>
    %31 = arith.minimumf %29, %30 : vector<8x512xf32>
    %32 = vector.broadcast %18 : vector<8x1xf32> to vector<8x512xf32>
    %33 = vector.broadcast %7 : vector<1x512xf32> to vector<8x512xf32>
    %34 = arith.maximumf %32, %33 : vector<8x512xf32>
    %35 = arith.subf %31, %34 : vector<8x512xf32>
    %cst = arith.constant 0.000000e+00 : f32
    %36 = vector.broadcast %cst : f32 to vector<8x512xf32>
    %37 = arith.maximumf %35, %36 : vector<8x512xf32>
    %38 = vector.broadcast %21 : vector<8x1xf32> to vector<8x512xf32>
    %39 = vector.broadcast %10 : vector<1x512xf32> to vector<8x512xf32>
    %40 = arith.minimumf %38, %39 : vector<8x512xf32>
    %41 = vector.broadcast %19 : vector<8x1xf32> to vector<8x512xf32>
    %42 = vector.broadcast %8 : vector<1x512xf32> to vector<8x512xf32>
    %43 = arith.maximumf %41, %42 : vector<8x512xf32>
    %44 = arith.subf %40, %43 : vector<8x512xf32>
    %cst_14 = arith.constant 0.000000e+00 : f32
    %45 = vector.broadcast %cst_14 : f32 to vector<8x512xf32>
    %46 = arith.maximumf %44, %45 : vector<8x512xf32>
    %47 = arith.mulf %37, %46 : vector<8x512xf32>
    %48 = vector.broadcast %25 : vector<8x1xf32> to vector<8x512xf32>
    %49 = vector.broadcast %28 : vector<1x512xf32> to vector<8x512xf32>
    %50 = arith.addf %48, %49 : vector<8x512xf32>
    %51 = arith.subf %50, %47 : vector<8x512xf32>
    %cst_15 = arith.constant 1.000000e-10 : f32
    %52 = vector.broadcast %cst_15 : f32 to vector<8x512xf32>
    %53 = arith.maximumf %51, %52 : vector<8x512xf32>
    %54 = tpu.reciprocal %53 {approx = true} : vector<8x512xf32> -> vector<8x512xf32>
    %55 = arith.mulf %47, %54 : vector<8x512xf32>
    %56 = vector.broadcast %22 : vector<8x1xf32> to vector<8x512xf32>
    %57 = vector.broadcast %15 : vector<1x512xf32> to vector<8x512xf32>
    %58 = arith.mulf %56, %57 : vector<8x512xf32>
    %cst_16 = arith.constant 5.000000e-01 : f32
    %59 = vector.broadcast %cst_16 : f32 to vector<8x512xf32>
    %60 = arith.cmpf ogt, %58, %59 : vector<8x512xf32>
    %cst_17 = arith.constant -1.000000e+00 : f32
    %61 = vector.broadcast %cst_17 : f32 to vector<8x512xf32>
    %62 = arith.select %60, %55, %61 : vector<8x512xi1>, vector<8x512xf32>
    %63 = tpu.iota {dimensions = array<i32: 0>} : vector<8x512xi32>
    %64 = arith.sitofp %63 : vector<8x512xi32> to vector<8x512xf32>
    %65 = tpu.iota {dimensions = array<i32: 1>} : vector<8x512xi32>
    %66 = arith.sitofp %65 : vector<8x512xi32> to vector<8x512xf32>
    %cst_18 = arith.constant dense<0xFF800000> : vector<512xf32>
    %67 = vector.multi_reduction <maximumf>, %62, %cst_18 [0] : vector<8x512xf32> to vector<512xf32>
    %68 = vector.shape_cast %67 : vector<512xf32> to vector<1x512xf32>
    %69 = vector.broadcast %68 : vector<1x512xf32> to vector<8x512xf32>
    %70 = arith.cmpf oeq, %62, %69 : vector<8x512xf32>
    %cst_19 = arith.constant 8.000000e+00 : f32
    %71 = vector.broadcast %cst_19 : f32 to vector<8x512xf32>
    %72 = arith.select %70, %64, %71 : vector<8x512xi1>, vector<8x512xf32>
    %cst_20 = arith.constant dense<0x7F800000> : vector<512xf32>
    %73 = vector.multi_reduction <minimumf>, %72, %cst_20 [0] : vector<8x512xf32> to vector<512xf32>
    %74 = vector.shape_cast %73 : vector<512xf32> to vector<1x512xf32>
    %cst_21 = arith.constant dense<0xFF800000> : vector<8xf32>
    %75 = vector.multi_reduction <maximumf>, %62, %cst_21 [1] : vector<8x512xf32> to vector<8xf32>
    %76 = vector.shape_cast %75 : vector<8xf32> to vector<8x1xf32>
    %77 = vector.broadcast %76 : vector<8x1xf32> to vector<8x512xf32>
    %78 = arith.cmpf oeq, %62, %77 : vector<8x512xf32>
    %cst_22 = arith.constant 5.120000e+02 : f32
    %79 = vector.broadcast %cst_22 : f32 to vector<8x512xf32>
    %80 = arith.select %78, %66, %79 : vector<8x512xi1>, vector<8x512xf32>
    %cst_23 = arith.constant dense<0x7F800000> : vector<8xf32>
    %81 = vector.multi_reduction <minimumf>, %80, %cst_23 [1] : vector<8x512xf32> to vector<8xf32>
    %82 = vector.shape_cast %81 : vector<8xf32> to vector<8x1xf32>
    %cst_24 = arith.constant 5.000000e-01 : f32
    %83 = vector.broadcast %cst_24 : f32 to vector<8x1xf32>
    %84 = arith.cmpf ogt, %22, %83 : vector<8x1xf32>
    %cst_25 = arith.constant 0.000000e+00 : f32
    %85 = vector.broadcast %cst_25 : f32 to vector<8x1xf32>
    %86 = arith.cmpf oge, %76, %85 : vector<8x1xf32>
    %87 = arith.andi %84, %86 : vector<8x1xi1>
    %88 = vector.broadcast %82 : vector<8x1xf32> to vector<8x512xf32>
    %89 = arith.cmpf oeq, %88, %66 : vector<8x512xf32>
    %90 = vector.broadcast %87 : vector<8x1xi1> to vector<8x512xi1>
    %91 = arith.andi %89, %90 : vector<8x512xi1>
    %92 = arith.extui %91 : vector<8x512xi1> to vector<8x512xi32>
    %93 = arith.sitofp %92 : vector<8x512xi32> to vector<8x512xf32>
    %cst_26 = arith.constant dense<0xFF800000> : vector<512xf32>
    %94 = vector.multi_reduction <maximumf>, %93, %cst_26 [0] : vector<8x512xf32> to vector<512xf32>
    %95 = vector.shape_cast %94 : vector<512xf32> to vector<1x512xf32>
    %cst_27 = arith.constant 5.000000e-01 : f32
    %96 = vector.broadcast %cst_27 : f32 to vector<1x512xf32>
    %97 = arith.cmpf ogt, %95, %96 : vector<1x512xf32>
    %cst_28 = arith.constant -1.000000e+00 : f32
    %98 = vector.broadcast %cst_28 : f32 to vector<8x512xf32>
    %99 = arith.select %91, %64, %98 : vector<8x512xi1>, vector<8x512xf32>
    %cst_29 = arith.constant dense<0xFF800000> : vector<512xf32>
    %100 = vector.multi_reduction <maximumf>, %99, %cst_29 [0] : vector<8x512xf32> to vector<512xf32>
    %101 = vector.shape_cast %100 : vector<512xf32> to vector<1x512xf32>
    %cst_30 = arith.constant 2.000000e+00 : f32
    %102 = vector.broadcast %cst_30 : f32 to vector<1x512xf32>
    %103 = arith.select %97, %102, %68 : vector<1x512xi1>, vector<1x512xf32>
    %104 = arith.select %97, %101, %74 : vector<1x512xi1>, vector<1x512xf32>
    %105 = vector.broadcast %104 : vector<1x512xf32> to vector<8x512xf32>
    %106 = arith.cmpf oeq, %64, %105 : vector<8x512xf32>
    %107 = arith.extui %106 : vector<8x512xi1> to vector<8x512xi32>
    %108 = arith.sitofp %107 : vector<8x512xi32> to vector<8x512xf32>
    %109 = vector.broadcast %18 : vector<8x1xf32> to vector<8x512xf32>
    %110 = arith.mulf %108, %109 : vector<8x512xf32>
    %cst_31 = arith.constant dense<0.000000e+00> : vector<512xf32>
    %111 = vector.multi_reduction <add>, %110, %cst_31 [0] : vector<8x512xf32> to vector<512xf32>
    %112 = vector.shape_cast %111 : vector<512xf32> to vector<1x512xf32>
    %113 = vector.broadcast %19 : vector<8x1xf32> to vector<8x512xf32>
    %114 = arith.mulf %108, %113 : vector<8x512xf32>
    %cst_32 = arith.constant dense<0.000000e+00> : vector<512xf32>
    %115 = vector.multi_reduction <add>, %114, %cst_32 [0] : vector<8x512xf32> to vector<512xf32>
    %116 = vector.shape_cast %115 : vector<512xf32> to vector<1x512xf32>
    %117 = vector.broadcast %20 : vector<8x1xf32> to vector<8x512xf32>
    %118 = arith.mulf %108, %117 : vector<8x512xf32>
    %cst_33 = arith.constant dense<0.000000e+00> : vector<512xf32>
    %119 = vector.multi_reduction <add>, %118, %cst_33 [0] : vector<8x512xf32> to vector<512xf32>
    %120 = vector.shape_cast %119 : vector<512xf32> to vector<1x512xf32>
    %121 = vector.broadcast %21 : vector<8x1xf32> to vector<8x512xf32>
    %122 = arith.mulf %108, %121 : vector<8x512xf32>
    %cst_34 = arith.constant dense<0.000000e+00> : vector<512xf32>
    %123 = vector.multi_reduction <add>, %122, %cst_34 [0] : vector<8x512xf32> to vector<512xf32>
    %124 = vector.shape_cast %123 : vector<512xf32> to vector<1x512xf32>
    %125 = arith.subf %9, %7 : vector<1x512xf32>
    %cst_35 = arith.constant 9.99999997E-7 : f32
    %126 = vector.broadcast %cst_35 : f32 to vector<1x512xf32>
    %127 = arith.maximumf %125, %126 : vector<1x512xf32>
    %128 = arith.subf %10, %8 : vector<1x512xf32>
    %cst_36 = arith.constant 9.99999997E-7 : f32
    %129 = vector.broadcast %cst_36 : f32 to vector<1x512xf32>
    %130 = arith.maximumf %128, %129 : vector<1x512xf32>
    %131 = arith.addf %7, %9 : vector<1x512xf32>
    %cst_37 = arith.constant 5.000000e-01 : f32
    %132 = vector.broadcast %cst_37 : f32 to vector<1x512xf32>
    %133 = arith.mulf %131, %132 : vector<1x512xf32>
    %134 = arith.addf %8, %10 : vector<1x512xf32>
    %cst_38 = arith.constant 5.000000e-01 : f32
    %135 = vector.broadcast %cst_38 : f32 to vector<1x512xf32>
    %136 = arith.mulf %134, %135 : vector<1x512xf32>
    %137 = arith.subf %120, %112 : vector<1x512xf32>
    %cst_39 = arith.constant 9.99999997E-7 : f32
    %138 = vector.broadcast %cst_39 : f32 to vector<1x512xf32>
    %139 = arith.maximumf %137, %138 : vector<1x512xf32>
    %140 = arith.subf %124, %116 : vector<1x512xf32>
    %cst_40 = arith.constant 9.99999997E-7 : f32
    %141 = vector.broadcast %cst_40 : f32 to vector<1x512xf32>
    %142 = arith.maximumf %140, %141 : vector<1x512xf32>
    %143 = arith.addf %112, %120 : vector<1x512xf32>
    %cst_41 = arith.constant 5.000000e-01 : f32
    %144 = vector.broadcast %cst_41 : f32 to vector<1x512xf32>
    %145 = arith.mulf %143, %144 : vector<1x512xf32>
    %146 = arith.subf %145, %133 : vector<1x512xf32>
    %cst_42 = arith.constant 1.000000e-01 : f32
    %147 = vector.broadcast %cst_42 : f32 to vector<1x512xf32>
    %148 = arith.mulf %147, %127 : vector<1x512xf32>
    %149 = arith.divf %146, %148 : vector<1x512xf32>
    %150 = arith.addf %116, %124 : vector<1x512xf32>
    %cst_43 = arith.constant 5.000000e-01 : f32
    %151 = vector.broadcast %cst_43 : f32 to vector<1x512xf32>
    %152 = arith.mulf %150, %151 : vector<1x512xf32>
    %153 = arith.subf %152, %136 : vector<1x512xf32>
    %cst_44 = arith.constant 1.000000e-01 : f32
    %154 = vector.broadcast %cst_44 : f32 to vector<1x512xf32>
    %155 = arith.mulf %154, %130 : vector<1x512xf32>
    %156 = arith.divf %153, %155 : vector<1x512xf32>
    %157 = arith.divf %139, %127 : vector<1x512xf32>
    %158 = math.log %157 : vector<1x512xf32>
    %cst_45 = arith.constant 2.000000e-01 : f32
    %159 = vector.broadcast %cst_45 : f32 to vector<1x512xf32>
    %160 = arith.divf %158, %159 : vector<1x512xf32>
    %161 = arith.divf %142, %130 : vector<1x512xf32>
    %162 = math.log %161 : vector<1x512xf32>
    %cst_46 = arith.constant 2.000000e-01 : f32
    %163 = vector.broadcast %cst_46 : f32 to vector<1x512xf32>
    %164 = arith.divf %162, %163 : vector<1x512xf32>
    %cst_47 = arith.constant 5.000000e-01 : f32
    %165 = vector.broadcast %cst_47 : f32 to vector<1x512xf32>
    %166 = arith.cmpf oge, %103, %165 : vector<1x512xf32>
    %cst_48 = arith.constant 1.000000e+00 : f32
    %cst_49 = arith.constant 0.000000e+00 : f32
    %167 = vector.broadcast %cst_48 : f32 to vector<1x512xf32>
    %168 = vector.broadcast %cst_49 : f32 to vector<1x512xf32>
    %169 = arith.select %166, %167, %168 : vector<1x512xi1>, vector<1x512xf32>
    %170 = arith.mulf %169, %15 : vector<1x512xf32>
    %171 = arith.subf %1, %149 : vector<1x512xf32>
    %172 = math.absf %171 : vector<1x512xf32>
    %cst_50 = arith.constant 1.000000e+00 : f32
    %173 = vector.broadcast %cst_50 : f32 to vector<1x512xf32>
    %174 = arith.cmpf olt, %172, %173 : vector<1x512xf32>
    %cst_51 = arith.constant 5.000000e-01 : f32
    %175 = vector.broadcast %cst_51 : f32 to vector<1x512xf32>
    %176 = arith.mulf %175, %172 : vector<1x512xf32>
    %177 = arith.mulf %176, %172 : vector<1x512xf32>
    %cst_52 = arith.constant 5.000000e-01 : f32
    %178 = vector.broadcast %cst_52 : f32 to vector<1x512xf32>
    %179 = arith.subf %172, %178 : vector<1x512xf32>
    %180 = arith.select %174, %177, %179 : vector<1x512xi1>, vector<1x512xf32>
    %181 = arith.mulf %180, %170 : vector<1x512xf32>
    %182 = vector.shape_cast %181 : vector<1x512xf32> to vector<1x1x512xf32>
    %cst_53 = arith.constant dense<0.000000e+00> : vector<1xf32>
    %183 = vector.multi_reduction <add>, %182, %cst_53 [1, 2] : vector<1x1x512xf32> to vector<1xf32>
    %184 = vector.shape_cast %183 : vector<1xf32> to vector<1x1x1xf32>
    %185 = vector.extract %184[0, 0, 0] : f32 from vector<1x1x1xf32>
    %186 = arith.subf %2, %156 : vector<1x512xf32>
    %187 = math.absf %186 : vector<1x512xf32>
    %cst_54 = arith.constant 1.000000e+00 : f32
    %188 = vector.broadcast %cst_54 : f32 to vector<1x512xf32>
    %189 = arith.cmpf olt, %187, %188 : vector<1x512xf32>
    %cst_55 = arith.constant 5.000000e-01 : f32
    %190 = vector.broadcast %cst_55 : f32 to vector<1x512xf32>
    %191 = arith.mulf %190, %187 : vector<1x512xf32>
    %192 = arith.mulf %191, %187 : vector<1x512xf32>
    %cst_56 = arith.constant 5.000000e-01 : f32
    %193 = vector.broadcast %cst_56 : f32 to vector<1x512xf32>
    %194 = arith.subf %187, %193 : vector<1x512xf32>
    %195 = arith.select %189, %192, %194 : vector<1x512xi1>, vector<1x512xf32>
    %196 = arith.mulf %195, %170 : vector<1x512xf32>
    %197 = vector.shape_cast %196 : vector<1x512xf32> to vector<1x1x512xf32>
    %cst_57 = arith.constant dense<0.000000e+00> : vector<1xf32>
    %198 = vector.multi_reduction <add>, %197, %cst_57 [1, 2] : vector<1x1x512xf32> to vector<1xf32>
    %199 = vector.shape_cast %198 : vector<1xf32> to vector<1x1x1xf32>
    %200 = vector.extract %199[0, 0, 0] : f32 from vector<1x1x1xf32>
    %201 = arith.addf %185, %200 : f32
    %202 = arith.subf %3, %160 : vector<1x512xf32>
    %203 = math.absf %202 : vector<1x512xf32>
    %cst_58 = arith.constant 1.000000e+00 : f32
    %204 = vector.broadcast %cst_58 : f32 to vector<1x512xf32>
    %205 = arith.cmpf olt, %203, %204 : vector<1x512xf32>
    %cst_59 = arith.constant 5.000000e-01 : f32
    %206 = vector.broadcast %cst_59 : f32 to vector<1x512xf32>
    %207 = arith.mulf %206, %203 : vector<1x512xf32>
    %208 = arith.mulf %207, %203 : vector<1x512xf32>
    %cst_60 = arith.constant 5.000000e-01 : f32
    %209 = vector.broadcast %cst_60 : f32 to vector<1x512xf32>
    %210 = arith.subf %203, %209 : vector<1x512xf32>
    %211 = arith.select %205, %208, %210 : vector<1x512xi1>, vector<1x512xf32>
    %212 = arith.mulf %211, %170 : vector<1x512xf32>
    %213 = vector.shape_cast %212 : vector<1x512xf32> to vector<1x1x512xf32>
    %cst_61 = arith.constant dense<0.000000e+00> : vector<1xf32>
    %214 = vector.multi_reduction <add>, %213, %cst_61 [1, 2] : vector<1x1x512xf32> to vector<1xf32>
    %215 = vector.shape_cast %214 : vector<1xf32> to vector<1x1x1xf32>
    %216 = vector.extract %215[0, 0, 0] : f32 from vector<1x1x1xf32>
    %217 = arith.addf %201, %216 : f32
    %218 = arith.subf %4, %164 : vector<1x512xf32>
    %219 = math.absf %218 : vector<1x512xf32>
    %cst_62 = arith.constant 1.000000e+00 : f32
    %220 = vector.broadcast %cst_62 : f32 to vector<1x512xf32>
    %221 = arith.cmpf olt, %219, %220 : vector<1x512xf32>
    %cst_63 = arith.constant 5.000000e-01 : f32
    %222 = vector.broadcast %cst_63 : f32 to vector<1x512xf32>
    %223 = arith.mulf %222, %219 : vector<1x512xf32>
    %224 = arith.mulf %223, %219 : vector<1x512xf32>
    %cst_64 = arith.constant 5.000000e-01 : f32
    %225 = vector.broadcast %cst_64 : f32 to vector<1x512xf32>
    %226 = arith.subf %219, %225 : vector<1x512xf32>
    %227 = arith.select %221, %224, %226 : vector<1x512xi1>, vector<1x512xf32>
    %228 = arith.mulf %227, %170 : vector<1x512xf32>
    %229 = vector.shape_cast %228 : vector<1x512xf32> to vector<1x1x512xf32>
    %cst_65 = arith.constant dense<0.000000e+00> : vector<1xf32>
    %230 = vector.multi_reduction <add>, %229, %cst_65 [1, 2] : vector<1x1x512xf32> to vector<1xf32>
    %231 = vector.shape_cast %230 : vector<1xf32> to vector<1x1x1xf32>
    %232 = vector.extract %231[0, 0, 0] : f32 from vector<1x1x1xf32>
    %233 = arith.addf %217, %232 : f32
    %cst_66 = arith.constant 5.000000e-01 : f32
    %234 = vector.broadcast %cst_66 : f32 to vector<1x512xf32>
    %235 = arith.cmpf ogt, %170, %234 : vector<1x512xf32>
    %236 = arith.subf %5, %6 : vector<1x512xf32>
    %237 = arith.subf %6, %5 : vector<1x512xf32>
    %238 = arith.select %235, %236, %237 : vector<1x512xi1>, vector<1x512xf32>
    %cst_67 = arith.constant 0.000000e+00 : f32
    %239 = vector.broadcast %cst_67 : f32 to vector<1x512xf32>
    %240 = arith.maximumf %238, %239 : vector<1x512xf32>
    %241 = math.absf %238 : vector<1x512xf32>
    %cst_68 = arith.constant 0.000000e+00 : f32
    %242 = vector.broadcast %cst_68 : f32 to vector<1x512xf32>
    %243 = arith.subf %242, %241 : vector<1x512xf32>
    %244 = math.exp %243 : vector<1x512xf32>
    %cst_69 = arith.constant 1.000000e+00 : f32
    %245 = vector.broadcast %cst_69 : f32 to vector<1x512xf32>
    %246 = arith.addf %245, %244 : vector<1x512xf32>
    %247 = math.log %246 : vector<1x512xf32>
    %248 = arith.addf %240, %247 : vector<1x512xf32>
    %249 = arith.mulf %248, %15 : vector<1x512xf32>
    %250 = vector.shape_cast %249 : vector<1x512xf32> to vector<1x1x512xf32>
    %cst_70 = arith.constant dense<0.000000e+00> : vector<1xf32>
    %251 = vector.multi_reduction <add>, %250, %cst_70 [1, 2] : vector<1x1x512xf32> to vector<1xf32>
    %252 = vector.shape_cast %251 : vector<1xf32> to vector<1x1x1xf32>
    %253 = vector.extract %252[0, 0, 0] : f32 from vector<1x1x1xf32>
    %254 = vector.shape_cast %170 : vector<1x512xf32> to vector<1x1x512xf32>
    %cst_71 = arith.constant dense<0.000000e+00> : vector<1xf32>
    %255 = vector.multi_reduction <add>, %254, %cst_71 [1, 2] : vector<1x1x512xf32> to vector<1xf32>
    %256 = vector.shape_cast %255 : vector<1xf32> to vector<1x1x1xf32>
    %257 = vector.extract %256[0, 0, 0] : f32 from vector<1x1x1xf32>
    %258 = vector.shape_cast %15 : vector<1x512xf32> to vector<1x1x512xf32>
    %cst_72 = arith.constant dense<0.000000e+00> : vector<1xf32>
    %259 = vector.multi_reduction <add>, %258, %cst_72 [1, 2] : vector<1x1x512xf32> to vector<1xf32>
    %260 = vector.shape_cast %259 : vector<1xf32> to vector<1x1x1xf32>
    %261 = vector.extract %260[0, 0, 0] : f32 from vector<1x1x1xf32>
    %262 = tpu.iota {dimensions = array<i32: 0>} : vector<8x128xi32>
    %c0_i32 = arith.constant 0 : i32
    %263 = vector.broadcast %c0_i32 : i32 to vector<8x128xi32>
    %264 = arith.cmpi eq, %262, %263 : vector<8x128xi32>
    %c1_i32 = arith.constant 1 : i32
    %265 = vector.broadcast %c1_i32 : i32 to vector<8x128xi32>
    %266 = arith.cmpi eq, %262, %265 : vector<8x128xi32>
    %c2_i32 = arith.constant 2 : i32
    %267 = vector.broadcast %c2_i32 : i32 to vector<8x128xi32>
    %268 = arith.cmpi eq, %262, %267 : vector<8x128xi32>
    %c3_i32 = arith.constant 3 : i32
    %269 = vector.broadcast %c3_i32 : i32 to vector<8x128xi32>
    %270 = arith.cmpi eq, %262, %269 : vector<8x128xi32>
    %cst_73 = arith.constant 0.000000e+00 : f32
    %271 = vector.broadcast %261 : f32 to vector<8x128xf32>
    %272 = vector.broadcast %cst_73 : f32 to vector<8x128xf32>
    %273 = arith.select %270, %271, %272 : vector<8x128xi1>, vector<8x128xf32>
    %274 = vector.broadcast %257 : f32 to vector<8x128xf32>
    %275 = arith.select %268, %274, %273 : vector<8x128xi1>, vector<8x128xf32>
    %276 = vector.broadcast %253 : f32 to vector<8x128xf32>
    %277 = arith.select %266, %276, %275 : vector<8x128xi1>, vector<8x128xf32>
    %278 = vector.broadcast %233 : f32 to vector<8x128xf32>
    %279 = arith.select %264, %278, %277 : vector<8x128xi1>, vector<8x128xf32>
    %c0_74 = arith.constant 0 : index
    %c0_75 = arith.constant 0 : index
    %c0_76 = arith.constant 0 : index
    %280 = vector.load %arg3[%c0_74, %c0_75, %c0_76] : memref<1x8x128xf32, #tpu.memory_space<vmem>>, vector<1x8x128xf32>
    %281 = vector.shape_cast %280 : vector<1x8x128xf32> to vector<8x128xf32>
    %282 = vector.shape_cast %279 : vector<8x128xf32> to vector<1x8x128xf32>
    tpu.vector_store %arg3[%c0_74, %c0_75, %c0_76], %282 {strides = array<i32>} : memref<1x8x128xf32, #tpu.memory_space<vmem>>, vector<1x8x128xf32>,
    return
  }
  func.func @transform_0(%arg0: i32) -> (i32, i32, i32) {
    %c0_i32 = arith.constant 0 : i32
    %c0_i32_0 = arith.constant 0 : i32
    %c0_i32_1 = arith.constant 0 : i32
    return %arg0, %c0_i32, %c0_i32_0 : i32, i32, i32
  }
  func.func @transform_1(%arg0: i32) -> (i32, i32) {
    %c0_i32 = arith.constant 0 : i32
    %c0_i32_0 = arith.constant 0 : i32
    %c0_i32_1 = arith.constant 0 : i32
    return %c0_i32, %c0_i32_0 : i32, i32
  }
  func.func @transform_2(%arg0: i32) -> (i32, i32, i32) {
    %c0_i32 = arith.constant 0 : i32
    %c0_i32_0 = arith.constant 0 : i32
    %c0_i32_1 = arith.constant 0 : i32
    return %arg0, %c0_i32, %c0_i32_0 : i32, i32, i32
  }
}

</mosaic_0001>

<bundles_post_ra>
// kernel: _srn_criterion_device.1
= control target key start
LH: loop header
LB: loop body
LE: loop exit
PB: predicated region body
PF: predicated region fallthrough
CT: control target
= control target key end

     0   :  { %s1648_s9 = smov 0   ;;  %s2322_s0 = inlined_call_operand.vmem [shape: f32[2,8,8], index: 0, kind: input, shape index: {}]   ;;  %s2323_s1 = inlined_call_operand.vmem [shape: f32[11,512], index: 1, kind: input, shape index: {}]   ;;  %s2324_s2 = inlined_call_operand.vmem [shape: f32[2,8,128], index: 2, kind: output, shape index: {}]  }
   0x1 LB: > { %s1654_s10 = sadd.s32 4294967295, %s1622_s9   ;;  %p1478_p0 = scmp.ge.s32.totalorder %s1622_s9, 1  ;;  %s1622_s9 = sphi %s1648_s9, %s12_s9  }
   0x2   : > { %p111_p1 = scmp.lt.s32.totalorder %s1622_s9, 3 }
   0x4   : > { %p112_p2 = pnand %p1478_p0, %p111_p1 }
   0x6   : > { %115 = sbr.rel (%p112_p2) target bundleno = 1028 (0x404), region = 28 }
   0xb   : > { %p131_p3 = scmp.lt.s32.totalorder %s1654_s10, 1  ;;  %v1624_v0 = vmov 2   ;;  %v1625_v1 = vmov 3   ;;  %s1626_s16 = smov 2   ;;  %v1627_v3 = vmov 0   ;;  %v1628_v4 = vmov 1  }
   0xc   : > { %1537 = vset.pattern.permute.xlu1 %v1624_v0  ;;  %1539 = vset.pattern.permute.xlu0 %v1625_v1  ;;  %s1629_s17 = smov 127   ;;  %v1486_v7 = vld [vmem:[%s2323_s1 + $0x6] ss:$8 sm:$0xf]  ;;  %v1630_v13 = vmov 4   ;;  %v184_v16 = vlaneseq  ;;  %s139_s26 = scvt.s32.f32 %s1654_s10 }
   0xd   : > { %s1660_s11 = scalar_select %p131_p3, %s1654_s10, 1  ;;  %v1488_v8 = vld [vmem:[%s2323_s1 + $0x20] ss:$8 sm:$0xf] }
   0xe   : > { %v1487_v9 = vld [vmem:[%s2323_s1 + $0x7] ss:$8 sm:$0xf]  ;;  %v1489_v10 = vld [vmem:[%s2323_s1 + $0x21] ss:$8 sm:$0xf]  ;;  %v1688_v11 = vadd.f32 %v1488_v8, %v1486_v7  ;;  %v1749_v58 = vsub.f32 %v1488_v8, %v1486_v7 }
   0xf   : > { %s1479_s12 = sshll.u32 %s1660_s11, 3  ;;  %v1690_v12 = vadd.f32 %v1489_v10, %v1487_v9  ;;  %v1697_v18 = vshrl.u32 %v184_v16, 7  ;;  %v1751_v59 = vsub.f32 %v1489_v10, %v1487_v9 }
  0x10   : > { %s134_s15 = scalar_lea.vmem %s2322_s0, %s1479_s12  ;;  %s138_s28 = scalar_lea.vmem %s2324_s2, %s1479_s12 }
  0x11   : > { %v1668_v2 = vld [vmem:[%s134_s15] sm:$0xff]  ;;  %2343 = vst [vmem:[#allocation2_spill] sm:$0xff] %v1697_v18  ;;  %v1700_v19 = vsub.s32 0, %v1697_v18  ;;  %v1703_v20 = vsub.s32 1, %v1697_v18  ;;  %v1706_v21 = vsub.s32 2, %v1697_v18  ;;  %v1709_v22 = vsub.s32 3, %v1697_v18 }
  0x12   : > { %167 = vrot.lane.b32.xlu0 %v1668_v2, %s1626_s16  ;;  %180 = vperm.xlu1 %1537, %v1668_v2   ;;  %vm484_vm5 = vcmp.gt.f32.partialorder %v1668_v2, 0.5 }
  0x13   : > { %v187_v24 = vrot.slane %v1488_v8, %v1700_v19  ;;  %v191_v25 = vrot.slane %v1488_v8, %v1703_v20  ;;  %v195_v26 = vrot.slane %v1488_v8, %v1706_v21  ;;  %v199_v27 = vrot.slane %v1488_v8, %v1709_v22 }
  0x14   : > { %v216_v28 = vrot.slane %v1486_v7, %v1700_v19  ;;  %v220_v29 = vrot.slane %v1486_v7, %v1703_v20  ;;  %v224_v30 = vrot.slane %v1486_v7, %v1706_v21  ;;  %v228_v31 = vrot.slane %v1486_v7, %v1709_v22 }
  0x15   : > { %v282_v32 = vrot.slane %v1487_v9, %v1700_v19  ;;  %v286_v33 = vrot.slane %v1487_v9, %v1703_v20  ;;  %v290_v34 = vrot.slane %v1487_v9, %v1706_v21  ;;  %v294_v35 = vrot.slane %v1487_v9, %v1709_v22 }
  0x16   : > { %1538 = vset.pattern.permute.xlu1 %v1627_v3  ;;  %v253_v37 = vrot.slane %v1489_v10, %v1700_v19  ;;  %v257_v38 = vrot.slane %v1489_v10, %v1703_v20  ;;  %v261_v39 = vrot.slane %v1489_v10, %v1706_v21  ;;  %v265_v40 = vrot.slane %v1489_v10, %v1709_v22 }
  0x17   : > { %209 = vperm.xlu1 %1538, %v1668_v2  }
  0x1b   : > { %1540 = vset.pattern.permute.xlu1 %v1628_v4 }
  0x1c   : > { %275 = vperm.xlu1 %1540, %v1668_v2  }
  0x20   : > { %1541 = vset.pattern.permute.xlu1 %v1624_v0 }
  0x84   : > { %v168_v5 = vpop.permute.xlu0 %167 }
  0x85   : > { %v170_v6 = vsub.f32 %v1668_v2, %v168_v5 }
  0x87   : > { %172 = vrot.lane.b32.xlu0 %v170_v6, %s1629_s17 }
  0x8b   : > { %246 = vperm.xlu0 %1539, %v1668_v2  }
  0x8d   : > { %v1694_v17 = vpop.permute.xlu1 %180 }
  0x8e   : > { %v204_v42 = vmin.f32 %v1694_v17, %v187_v24  ;;  %v205_v43 = vmin.f32 %v1694_v17, %v191_v25  ;;  %v206_v44 = vmin.f32 %v1694_v17, %v195_v26  ;;  %v207_v45 = vmin.f32 %v1694_v17, %v199_v27 }
  0x8f   : > { %1542 = vset.pattern.permute.xlu0 %v1630_v13 }
  0x90   : > { %362 = vperm.xlu0 %1542, %v1668_v2  }
  0x92   : > { %v1711_v23 = vpop.permute.xlu1 %209 }
  0x93   : > { %v233_v46 = vmax.f32 %v1711_v23, %v216_v28  ;;  %v234_v47 = vmax.f32 %v1711_v23, %v220_v29  ;;  %v235_v48 = vmax.f32 %v1711_v23, %v224_v30  ;;  %v236_v49 = vmax.f32 %v1711_v23, %v228_v31 }
  0x95   : > { %v237_v60 = vsub.f32 %v204_v42, %v233_v46  ;;  %v238_v61 = vsub.f32 %v205_v43, %v234_v47  ;;  %v239_v62 = vsub.f32 %v206_v44, %v235_v48  ;;  %v240_v63 = vsub.f32 %v207_v45, %v236_v49  ;;  %v1490_v45 = vld [vmem:[%s2323_s1 + $0x22] ss:$8 sm:$0xf] }
  0x97   : > { %v1725_v36 = vpop.permute.xlu1 %275  ;;  %v244_v24 = vmax.f32 %v240_v63, 0.0 }
  0x98   : > { %v299_v50 = vmax.f32 %v1725_v36, %v282_v32  ;;  %v300_v51 = vmax.f32 %v1725_v36, %v286_v33  ;;  %v301_v52 = vmax.f32 %v1725_v36, %v290_v34  ;;  %v302_v53 = vmax.f32 %v1725_v36, %v294_v35 }
  0xf9   : > { %v173_v14 = vpop.permute.xlu0 %172 }
  0xfa   : > { %v175_v15 = vmul.f32 %v173_v14, %v170_v6  ;;  %v178_v6 = vmul.f32 %v1751_v59, %v1749_v58  ;;  %v242_v14 = vmax.f32 %v238_v61, 0.0 }
  0xfc   : > { %317 = vperm.xlu1 %1541, %v175_v15   ;;  %v243_v15 = vmax.f32 %v239_v62, 0.0  ;;  %v324_v25 = vrot.slane %v178_v6, %v1700_v19  ;;  %v328_v26 = vrot.slane %v178_v6, %v1703_v20  ;;  %v332_v27 = vrot.slane %v178_v6, %v1706_v21 }
  0xfd   : > { %v336_v28 = vrot.slane %v178_v6, %v1709_v22 }
 0x100   : > { %1543 = vset.pattern.permute.xlu1 %v1630_v13  ;;  %v241_v13 = vmax.f32 %v237_v60, 0.0 }
 0x106   : > { %v1731_v41 = vpop.permute.xlu0 %246 }
 0x107   : > { %v270_v54 = vmin.f32 %v1731_v41, %v253_v37  ;;  %v271_v55 = vmin.f32 %v1731_v41, %v257_v38  ;;  %v272_v56 = vmin.f32 %v1731_v41, %v261_v39  ;;  %v273_v57 = vmin.f32 %v1731_v41, %v265_v40 }
 0x108   : > { %v161_v39 = vstv %s139_s26 }
 0x109   : > { %v303_v0 = vsub.f32 %v270_v54, %v299_v50  ;;  %v304_v1 = vsub.f32 %v271_v55, %v300_v51  ;;  %v305_v4 = vsub.f32 %v272_v56, %v301_v52  ;;  %v306_v5 = vsub.f32 %v273_v57, %v302_v53 }
 0x10a   : > { %vm162_vm0 = vcmp.eq.f32.partialorder %v1490_v45, %v161_v39  ;;  %v2329_v50 = vmov 0.0  }
 0x10b   : > { %v307_v7 = vmax.f32 %v303_v0, 0.0  ;;  %v308_v8 = vmax.f32 %v304_v1, 0.0  ;;  %v309_v9 = vmax.f32 %v305_v4, 0.0  ;;  %v310_v10 = vmax.f32 %v306_v5, 0.0  ;;  %v363_v54 = vpop.permute.xlu0 %362 }
 0x10c   : > { %v1491_v51 = vsel %vm162_vm0, 1.0, %v2329_v50 }
 0x10d   : > { %v311_v30 = vmul.f32 %v307_v7, %v241_v13  ;;  %v312_v31 = vmul.f32 %v308_v8, %v242_v14  ;;  %v313_v32 = vmul.f32 %v309_v9, %v243_v15  ;;  %v314_v33 = vmul.f32 %v310_v10, %v244_v24 }
 0x10e   : > { %v1765_v52 = vrot.slane %v1491_v51, %v1700_v19  ;;  %v1768_v53 = vrot.slane %v1491_v51, %v1703_v20  ;;  %v1771_v55 = vrot.slane %v1491_v51, %v1706_v21  ;;  %v1774_v56 = vrot.slane %v1491_v51, %v1709_v22 }
 0x110   : > { %2344 = vst [vmem:[#allocation3_spill] sm:$0xff] %v1765_v52  ;;  %2345 = vst [vmem:[#allocation4_spill] sm:$0xff] %v1768_v53  ;;  %v386_v57 = vmul.f32 %v1765_v52, %v363_v54  ;;  %v387_v60 = vmul.f32 %v1768_v53, %v363_v54  ;;  %v388_v61 = vmul.f32 %v1771_v55, %v363_v54 }
 0x111   : > { %2346 = vst [vmem:[#allocation5_spill] sm:$0xff] %v1771_v55  ;;  %2347 = vst [vmem:[#allocation6_spill] sm:$0xff] %v1774_v56  ;;  %v389_v62 = vmul.f32 %v1774_v56, %v363_v54 }
 0x112   : > { %vm390_vm1 = vcmp.gt.f32.partialorder %v386_v57, 0.5  ;;  %vm391_vm2 = vcmp.gt.f32.partialorder %v387_v60, 0.5  ;;  %vm392_vm3 = vcmp.gt.f32.partialorder %v388_v61, 0.5 }
 0x113   : > { %vm393_vm4 = vcmp.gt.f32.partialorder %v389_v62, 0.5 }
 0x177   : > { %v318_v29 = vpop.permute.xlu1 %317 }
 0x178   : > { %v341_v34 = vadd.f32 %v324_v25, %v318_v29  ;;  %v342_v35 = vadd.f32 %v328_v26, %v318_v29  ;;  %v343_v37 = vadd.f32 %v332_v27, %v318_v29  ;;  %v344_v38 = vadd.f32 %v336_v28, %v318_v29 }
 0x179   : > { %v1793_v26 = vand.u32 127, %v184_v16 }
 0x17a   : > { %v345_v40 = vsub.f32 %v341_v34, %v311_v30  ;;  %v346_v42 = vsub.f32 %v342_v35, %v312_v31  ;;  %v347_v43 = vsub.f32 %v343_v37, %v313_v32  ;;  %v348_v44 = vsub.f32 %v344_v38, %v314_v33 }
 0x17b   : > { %v1796_v27 = vadd.s32 128, %v1793_v26  ;;  %v1799_v28 = vadd.s32 256, %v1793_v26  ;;  %v1802_v29 = vadd.s32 384, %v1793_v26 }
 0x17c   : > { %v349_v46 = vmax.f32 %v345_v40, 1e-10  ;;  %v350_v47 = vmax.f32 %v346_v42, 1e-10  ;;  %v351_v48 = vmax.f32 %v347_v43, 1e-10 }
 0x17d   : > { %v352_v49 = vmax.f32 %v348_v44, 1e-10  ;;  %v409_v16 = vcvt.s32.f32 %v1802_v29 }
 0x17e   : > { %1544 = vrcp.f32 %v349_v46 }
 0x17f   : > { %1546 = vrcp.f32 %v350_v47 }
 0x180   : > { %1548 = vrcp.f32 %v351_v48 }
 0x181   : > { %1550 = vrcp.f32 %v352_v49 }
 0x18b   : > { %v1545_v63 = vpop.eup %1544 }
 0x18c   : > { %v1547_v0 = vpop.eup %1546  ;;  %v357_v1 = vmul.f32 %v1545_v63, %v311_v30  ;;  %v406_v30 = vcvt.s32.f32 %v1793_v26 }
 0x18d   : > { %v1549_v4 = vpop.eup %1548  ;;  %v358_v5 = vmul.f32 %v1547_v0, %v312_v31  ;;  %v407_v31 = vcvt.s32.f32 %v1796_v27 }
 0x18e   : > { %v1551_v6 = vpop.eup %1550  ;;  %v359_v13 = vmul.f32 %v1549_v4, %v313_v32  ;;  %v1780_v14 = vsel %vm390_vm1, %v357_v1, -1.0  ;;  %v408_v32 = vcvt.s32.f32 %v1799_v28 }
 0x18f   : > { %v360_v15 = vmul.f32 %v1551_v6, %v314_v33  ;;  %v1782_v24 = vsel %vm391_vm2, %v358_v5, -1.0  ;;  %v410_v43 = vrot.slane %v1780_v14, 4 }
 0x190   : > { %v1784_v7 = vsel %vm392_vm3, %v359_v13, -1.0  ;;  %v466_v8 = vmax.f32 %v1780_v14, %v1782_v24  ;;  %v416_v44 = vrot.slane %v1782_v24, 4 }
 0x191   : > { %v1788_v9 = vsel %vm393_vm4, %v360_v15, -1.0  ;;  %v422_v45 = vrot.slane %v1784_v7, 4  ;;  %v411_v47 = vmax.f32 %v1780_v14, %v410_v43 }
 0x192   : > { %v467_v10 = vmax.f32 %v1784_v7, %v1788_v9  ;;  %v428_v46 = vrot.slane %v1788_v9, 4 }
 0x193   : > { %v423_v48 = vmax.f32 %v1784_v7, %v422_v45  ;;  %v412_v51 = vrot.slane %v411_v47, 2 }
 0x194   : > { %v468_v25 = vmax.f32 %v466_v8, %v467_v10  ;;  %v429_v49 = vmax.f32 %v1788_v9, %v428_v46 }
 0x195   : > { %v424_v57 = vrot.slane %v423_v48, 2  ;;  %v413_v61 = vmax.f32 %v411_v47, %v412_v51 }
 0x196   : > { %469 = vmax.xlane.f32.xlu1 %v468_v25  ;;  %v430_v60 = vrot.slane %v429_v49, 2  ;;  %v696_v25 = vmax.f32 %v1749_v58, 1e-06 }
 0x197   : > { %v425_v63 = vmax.f32 %v423_v48, %v424_v57  ;;  %v414_v1 = vrot.slane %v413_v61, 1 }
 0x198   : > { %v431_v0 = vmax.f32 %v429_v49, %v430_v60  ;;  %v848_v60 = vrot.slane %v696_v25, %v1700_v19 }
 0x199   : > { %v426_v5 = vrot.slane %v425_v63, 1  ;;  %v1830_v13 = vmax.f32 %v413_v61, %v414_v1  ;;  %v860_v1 = vrot.slane %v696_v25, %v1709_v22 }
 0x19a   : > { %v432_v6 = vrot.slane %v431_v0, 1 }
 0x19b   : > { %v1834_v8 = vmax.f32 %v425_v63, %v426_v5  ;;  %vm434_vm12 = vcmp.eq.f32.partialorder %v1780_v14, %v1830_v13  ;;  %v852_v63 = vrot.slane %v696_v25, %v1703_v20 }
 0x19c   : > { %v1836_v10 = vmax.f32 %v431_v0, %v432_v6  ;;  %v856_v0 = vrot.slane %v696_v25, %v1706_v21 }
 0x19d   : > { %vm436_vm14 = vcmp.eq.f32.partialorder %v1784_v7, %v1834_v8 }
 0x19e   : > { %vm437_vm15 = vcmp.eq.f32.partialorder %v1788_v9, %v1836_v10 }
 0x21f   : > { %v470_v33 = vpop.xlane.xlu1 %469 }
 0x220   : > { %vm485_vm6 = vcmp.ge.f32.partialorder %v470_v33, 0.0  ;;  %vm471_vm7 = vcmp.eq.f32.partialorder %v1780_v14, %v470_v33  ;;  %vm472_vm8 = vcmp.eq.f32.partialorder %v1782_v24, %v470_v33  ;;  %vm473_vm9 = vcmp.eq.f32.partialorder %v1784_v7, %v470_v33 }
 0x221   : > { %vm486_vm10 = vmand %vm484_vm5, %vm485_vm6  ;;  %vm474_vm11 = vcmp.eq.f32.partialorder %v1788_v9, %v470_v33  ;;  %v475_v34 = vsel %vm471_vm7, %v406_v30, 512.0  ;;  %v476_v35 = vsel %vm472_vm8, %v407_v31, 512.0  ;;  %v477_v2 = vsel %vm473_vm9, %v408_v32, 512.0 }
 0x222   : > { %v491_v37 = vsel %vm486_vm10, 1, %v1627_v3  ;;  %v478_v38 = vsel %vm474_vm11, %v409_v16, 512.0  ;;  %v479_v39 = vmin.f32 %v475_v34, %v476_v35  ;;  %v417_v3 = vmax.f32 %v1782_v24, %v416_v44 }
 0x223   : > { %493 = vperm.xlu1 %1543, %v491_v37   ;;  %v480_v40 = vmin.f32 %v477_v2, %v478_v38  ;;  %v1840_v33 = vcvt.s32.f32 %v1697_v18  ;;  %v1851_v34 = vmax.f32 %v1751_v59, 1e-06  ;;  %v751_v35 = vmul.f32 0.1, %v696_v25 }
 0x224   : > { %v418_v54 = vrot.slane %v417_v3, 2 }
 0x225   : > { %v481_v42 = vmin.f32 %v479_v39, %v480_v40  ;;  %v438_v58 = vsel %vm434_vm12, %v1840_v33, 8.0  ;;  %v440_v37 = vsel %vm436_vm14, %v1840_v33, 8.0  ;;  %v441_v14 = vsel %vm437_vm15, %v1840_v33, 8.0 }
 0x226   : > { %v419_v62 = vmax.f32 %v417_v3, %v418_v54  ;;  %v442_v38 = vrot.slane %v438_v58, 4  ;;  %v756_v39 = vrot.slane %v751_v35, %v1700_v19  ;;  %v814_v7 = vmul.f32 0.1, %v1851_v34 }
 0x227   : > { %482 = vmin.xlane.f32.xlu0 %v481_v42  ;;  %v454_v40 = vrot.slane %v440_v37, 4  ;;  %v460_v9 = vrot.slane %v441_v14, 4  ;;  %v760_v59 = vrot.slane %v751_v35, %v1703_v20  ;;  %v764_v42 = vrot.slane %v751_v35, %v1706_v21 }
 0x228   : > { %v420_v4 = vrot.slane %v419_v62, 1  ;;  %v768_v43 = vrot.slane %v751_v35, %v1709_v22  ;;  %v443_v44 = vmin.f32 %v438_v58, %v442_v38  ;;  %1552 = vrcp.f32 %v756_v39 }
 0x229   : > { %v819_v46 = vrot.slane %v814_v7, %v1700_v19  ;;  %v455_v47 = vmin.f32 %v440_v37, %v454_v40  ;;  %v461_v3 = vmin.f32 %v441_v14, %v460_v9  ;;  %1554 = vrcp.f32 %v760_v59 }
 0x22a   : > { %v1832_v15 = vmax.f32 %v419_v62, %v420_v4  ;;  %v823_v48 = vrot.slane %v814_v7, %v1703_v20  ;;  %1556 = vrcp.f32 %v764_v42  ;;  %v827_v49 = vrot.slane %v814_v7, %v1706_v21  ;;  %v1484_v42 = vld [vmem:[%s2323_s1 + $0x4] ss:$8 sm:$0xf] }
 0x22b   : > { %1558 = vrcp.f32 %v768_v43  ;;  %v831_v51 = vrot.slane %v814_v7, %v1709_v22  ;;  %v444_v54 = vrot.slane %v443_v44, 2  ;;  %v456_v61 = vrot.slane %v455_v47, 2  ;;  %v1485_v43 = vld [vmem:[%s2323_s1 + $0x5] ss:$8 sm:$0xf] }
 0x22c   : > { %vm435_vm13 = vcmp.eq.f32.partialorder %v1782_v24, %v1832_v15  ;;  %1560 = vrcp.f32 %v819_v46  ;;  %v462_v62 = vrot.slane %v461_v3, 2  ;;  %v890_v6 = vrot.slane %v1851_v34, %v1700_v19 }
 0x22d   : > { %v439_v2 = vsel %vm435_vm13, %v1840_v33, 8.0  ;;  %1562 = vrcp.f32 %v823_v48  ;;  %v445_v4 = vmin.f32 %v443_v44, %v444_v54  ;;  %v457_v35 = vmin.f32 %v455_v47, %v456_v61 }
 0x22e   : > { %v448_v24 = vrot.slane %v439_v2, 4  ;;  %1564 = vrcp.f32 %v827_v49  ;;  %v463_v58 = vmin.f32 %v461_v3, %v462_v62  ;;  %v1875_v37 = vmul.f32 0.5, %v1688_v11 }
 0x22f   : > { %1566 = vrcp.f32 %v831_v51  ;;  %v898_v25 = vrot.slane %v1851_v34, %v1706_v21  ;;  %v1632_v14 = vmov 1966171168   ;;  %v446_v39 = vrot.slane %v445_v4, 1 }
 0x230   : > { %v449_v45 = vmin.f32 %v439_v2, %v448_v24  ;;  %1568 = vrcp.f32 %v848_v60  ;;  %v894_v2 = vrot.slane %v1851_v34, %v1703_v20  ;;  %v946_v38 = vunpack.c.l.s4 %v1632_v14 }
 0x231   : > { %1570 = vrcp.f32 %v852_v63  ;;  %v902_v24 = vrot.slane %v1851_v34, %v1709_v22  ;;  %v1882_v40 = vmul.f32 0.5, %v1690_v12  ;;  %v458_v9 = vrot.slane %v457_v35, 1 }
 0x232   : > { %v450_v57 = vrot.slane %v449_v45, 2  ;;  %1572 = vrcp.f32 %v856_v0  ;;  %v464_v59 = vrot.slane %v463_v58, 1  ;;  %v947_v44 = vunpack.c.0.s8 %v946_v38 }
 0x233   : > { %1574 = vrcp.f32 %v860_v1  ;;  %v1902_v3 = vmin.f32 %v457_v35, %v458_v9  ;;  %v1908_v54 = vsub.f32 %v1484_v42, %v1485_v43  ;;  %v1948_v14 = vsub.f32 %v1485_v43, %v1484_v42 }
 0x234   : > { %v451_v5 = vmin.f32 %v449_v45, %v450_v57  ;;  %1576 = vrcp.f32 %v890_v6  ;;  %v1896_v45 = vmin.f32 %v445_v4, %v446_v39  ;;  %v1904_v48 = vmin.f32 %v463_v58, %v464_v59 }
 0x235   : > { %v1884_v11 = vpop.eup %1552  ;;  %1578 = vrcp.f32 %v894_v2  ;;  %2348 = vst [vmem:[#allocation7_spill] sm:$0xff] %v1908_v54  ;;  %v1929_v6 = vsub.s32 %v947_v44, %v1697_v18  ;;  %2352 = vst [vmem:[#allocation9_spill] sm:$0xff] %v1948_v14 }
 0x236   : > { %v452_v7 = vrot.slane %v451_v5, 1  ;;  %v1892_v34 = vpop.eup %1554  ;;  %1580 = vrcp.f32 %v898_v25 }
 0x237   : > { %v1894_v12 = vpop.eup %1556  ;;  %1582 = vrcp.f32 %v902_v24  ;;  %2349 = vst [vmem:[#allocation8_spill] sm:$0xff] %v1929_v6 }
 0x238   : > { %v1898_v46 = vmin.f32 %v451_v5, %v452_v7  ;;  %v1900_v47 = vpop.eup %1558 }
 0x239   : > { %v1910_v57 = vpop.eup %1560 }
 0x23a   : > { %v1920_v0 = vpop.eup %1562 }
 0x23b   : > { %v1931_v58 = vpop.eup %1564 }
 0x23c   : > { %v1939_v2 = vpop.eup %1566 }
 0x23d   : > { %v1954_v28 = vpop.eup %1568 }
 0x29e   : > { %v494_v49 = vpop.permute.xlu1 %493 }
 0x29f   : > { %vm495_vm0 = vcmp.eq.s32.totalorder %v494_v49, 1 }
 0x2b0   : > { %v483_v35 = vpop.xlane.xlu0 %482 }
 0x2b1   : > { %vm487_vm1 = vcmp.eq.f32.partialorder %v483_v35, %v406_v30  ;;  %vm488_vm2 = vcmp.eq.f32.partialorder %v483_v35, %v407_v31  ;;  %vm489_vm3 = vcmp.eq.f32.partialorder %v483_v35, %v408_v32  ;;  %vm1943_vm4 = vcmp.eq.f32.partialorder %v483_v35, %v409_v16  ;;  %v1963_v16 = vpop.eup %1570 }
 0x2b2   : > { %vm496_vm5 = vmand %vm487_vm1, %vm495_vm0  ;;  %v1968_v9 = vpop.eup %1572 }
 0x2b3   : > { %vm497_vm6 = vmand %vm488_vm2, %vm495_vm0  ;;  %v1492_v29 = vsel %vm496_vm5, 1.0, %v2329_v50  ;;  %v536_v30 = vsel %vm496_vm5, %v1840_v33, -1.0  ;;  %2353 = vst [vmem:[#allocation10_spill] sm:$0xff] %v1968_v9  ;;  %v1975_v35 = vpop.eup %1574 }
 0x2b4   : > { %vm498_vm7 = vmand %vm489_vm3, %vm495_vm0  ;;  %v1493_v38 = vsel %vm497_vm6, 1.0, %v2329_v50  ;;  %v508_v24 = vrot.slane %v1492_v29, 4  ;;  %v537_v39 = vsel %vm497_vm6, %v1840_v33, -1.0  ;;  %v540_v7 = vrot.slane %v536_v30, 4  ;;  %2354 = vst [vmem:[#allocation11_spill] sm:$0xff] %v1975_v35  ;;  %v1979_v5 = vpop.eup %1576 }
 0x2b5   : > { %vm499_vm8 = vmand %vm1943_vm4, %vm495_vm0  ;;  %v1494_v59 = vsel %vm498_vm7, 1.0, %v2329_v50  ;;  %v514_v42 = vrot.slane %v1493_v38, 4  ;;  %v538_v43 = vsel %vm498_vm7, %v1840_v33, -1.0  ;;  %v546_v44 = vrot.slane %v537_v39, 4  ;;  %2355 = vst [vmem:[#allocation12_spill] sm:$0xff] %v1979_v5  ;;  %v1981_v63 = vpop.eup %1578 }
 0x2b6   : > { %v1495_v32 = vsel %vm499_vm8, 1.0, %v2329_v50  ;;  %v509_v31 = vmax.f32 %v1492_v29, %v508_v24  ;;  %v520_v27 = vrot.slane %v1494_v59, 4  ;;  %v539_v26 = vsel %vm499_vm8, %v1840_v33, -1.0  ;;  %2356 = vst [vmem:[#allocation13_spill] sm:$0xff] %v1981_v63  ;;  %v1983_v18 = vpop.eup %1580 }
 0x2b7   : > { %v515_v49 = vmax.f32 %v1493_v38, %v514_v42  ;;  %v526_v4 = vrot.slane %v1495_v32, 4  ;;  %v541_v25 = vmax.f32 %v536_v30, %v540_v7  ;;  %v547_v1 = vmax.f32 %v537_v39, %v546_v44  ;;  %2357 = vst [vmem:[#allocation14_spill] sm:$0xff] %v1983_v18  ;;  %v1985_v6 = vpop.eup %1582 }
 0x2b8   : > { %v510_v62 = vrot.slane %v509_v31, 2  ;;  %v521_v61 = vmax.f32 %v1494_v59, %v520_v27  ;;  %v552_v60 = vrot.slane %v538_v43, 4  ;;  %v558_v51 = vrot.slane %v539_v26, 4  ;;  %2358 = vst [vmem:[#allocation15_spill] sm:$0xff] %v1985_v6 }
 0x2b9   : > { %v516_v54 = vrot.slane %v515_v49, 2  ;;  %v527_v50 = vmax.f32 %v1495_v32, %v526_v4  ;;  %v542_v29 = vrot.slane %v541_v25, 2  ;;  %v548_v24 = vrot.slane %v547_v1, 2 }
 0x2ba   : > { %v511_v56 = vmax.f32 %v509_v31, %v510_v62  ;;  %v522_v55 = vrot.slane %v521_v61, 2  ;;  %v553_v38 = vmax.f32 %v538_v43, %v552_v60  ;;  %v559_v42 = vmax.f32 %v539_v26, %v558_v51 }
 0x2bb   : > { %v517_v30 = vmax.f32 %v515_v49, %v516_v54  ;;  %v528_v39 = vrot.slane %v527_v50, 2  ;;  %v543_v7 = vmax.f32 %v541_v25, %v542_v29  ;;  %v549_v44 = vmax.f32 %v547_v1, %v548_v24 }
 0x2bc   : > { %v512_v53 = vrot.slane %v511_v56, 1  ;;  %v523_v27 = vmax.f32 %v521_v61, %v522_v55  ;;  %v554_v59 = vrot.slane %v553_v38, 2  ;;  %v560_v52 = vrot.slane %v559_v42, 2 }
 0x2bd   : > { %v518_v63 = vrot.slane %v517_v30, 1  ;;  %v529_v18 = vmax.f32 %v527_v50, %v528_v39  ;;  %v544_v5 = vrot.slane %v543_v7, 1  ;;  %v550_v4 = vrot.slane %v549_v44, 1 }
 0x2be   : > { %v513_v32 = vmax.f32 %v511_v56, %v512_v53  ;;  %v524_v35 = vrot.slane %v523_v27, 1  ;;  %v555_v9 = vmax.f32 %v553_v38, %v554_v59  ;;  %v561_v6 = vmax.f32 %v559_v42, %v560_v52 }
 0x2bf   : > { %v1987_v62 = vmax.f32 %v517_v30, %v518_v63  ;;  %v530_v60 = vrot.slane %v529_v18, 1  ;;  %v545_v51 = vmax.f32 %v543_v7, %v544_v5  ;;  %v551_v54 = vmax.f32 %v549_v44, %v550_v4 }
 0x2c0   : > { %v1989_v26 = vmax.f32 %v523_v27, %v524_v35  ;;  %vm532_vm9 = vcmp.gt.f32.partialorder %v513_v32, 0.5  ;;  %v556_v1 = vrot.slane %v555_v9, 1  ;;  %v562_v55 = vrot.slane %v561_v6, 1 }
 0x2c1   : > { %v1991_v61 = vmax.f32 %v529_v18, %v530_v60  ;;  %vm533_vm10 = vcmp.gt.f32.partialorder %v1987_v62, 0.5  ;;  %v568_v50 = vsel %vm532_vm9, %v545_v51, %v1896_v45  ;;  %v2008_v5 = vsel %vm532_vm9, 2.0, %v1830_v13 }
 0x2c2   : > { %vm534_vm11 = vcmp.gt.f32.partialorder %v1989_v26, 0.5  ;;  %v557_v52 = vmax.f32 %v555_v9, %v556_v1  ;;  %v563_v56 = vmax.f32 %v561_v6, %v562_v55  ;;  %v569_v18 = vsel %vm533_vm10, %v551_v54, %v1898_v46  ;;  %2359 = vst [vmem:[#allocation16_spill] sm:$0xff] %v2008_v5 }
 0x2c3   : > { %vm535_vm12 = vcmp.gt.f32.partialorder %v1991_v61, 0.5  ;;  %vm572_vm13 = vcmp.eq.f32.partialorder %v1840_v33, %v568_v50  ;;  %vm573_vm14 = vcmp.eq.f32.partialorder %v1840_v33, %v569_v18  ;;  %v2360_v46 = vmov 0.0  }
 0x2c4   : > { %v570_v6 = vsel %vm534_vm11, %v557_v52, %v1902_v3  ;;  %v571_v31 = vsel %vm535_vm12, %v563_v56, %v1904_v48  ;;  %v2020_v9 = vsel %vm572_vm13, 1.0, %v2360_v46  ;;  %v2023_v13 = vsel %vm573_vm14, 1.0, %v2360_v46 }
 0x2c5   : > { %vm574_vm15 = vcmp.eq.f32.partialorder %v1840_v33, %v570_v6  ;;  %vm575_vm0 = vcmp.eq.f32.partialorder %v1840_v33, %v571_v31  ;;  %v584_v48 = vmul.f32 %v2020_v9, %v1711_v23  ;;  %v585_v35 = vmul.f32 %v2023_v13, %v1711_v23 }
 0x2c6   : > { %v2026_v43 = vsel %vm574_vm15, 1.0, %v2360_v46  ;;  %v2029_v3 = vsel %vm575_vm0, 1.0, %v2360_v46  ;;  %v612_v25 = vmul.f32 %v2020_v9, %v1725_v36  ;;  %v613_v29 = vmul.f32 %v2023_v13, %v1725_v36 }
 0x2c7   : > { %v586_v33 = vmul.f32 %v2026_v43, %v1711_v23  ;;  %v587_v49 = vmul.f32 %v2029_v3, %v1711_v23  ;;  %v588_v24 = vrot.slane %v584_v48, 4  ;;  %v594_v38 = vrot.slane %v585_v35, 4 }
 0x2c8   : > { %v614_v42 = vmul.f32 %v2026_v43, %v1725_v36  ;;  %v615_v30 = vmul.f32 %v2029_v3, %v1725_v36  ;;  %v616_v44 = vrot.slane %v612_v25, 4  ;;  %v622_v27 = vrot.slane %v613_v29, 4 }
 0x2c9   : > { %v600_v39 = vrot.slane %v586_v33, 4  ;;  %v606_v7 = vrot.slane %v587_v49, 4  ;;  %v589_v59 = vadd.f32 %v588_v24, %v584_v48  ;;  %v595_v23 = vadd.f32 %v594_v38, %v585_v35 }
 0x2ca   : > { %v628_v4 = vrot.slane %v614_v42, 4  ;;  %v634_v32 = vrot.slane %v615_v30, 4  ;;  %v617_v54 = vadd.f32 %v616_v44, %v612_v25  ;;  %v623_v1 = vadd.f32 %v622_v27, %v613_v29 }
 0x2cb   : > { %v601_v60 = vadd.f32 %v600_v39, %v586_v33  ;;  %v607_v51 = vadd.f32 %v606_v7, %v587_v49  ;;  %v590_v55 = vrot.slane %v589_v59, 2  ;;  %v596_v50 = vrot.slane %v595_v23, 2 }
 0x2cc   : > { %v629_v52 = vadd.f32 %v628_v4, %v614_v42  ;;  %v635_v56 = vadd.f32 %v634_v32, %v615_v30  ;;  %v618_v31 = vrot.slane %v617_v54, 2  ;;  %v624_v36 = vrot.slane %v623_v1, 2 }
 0x2cd   : > { %v602_v18 = vrot.slane %v601_v60, 2  ;;  %v608_v6 = vrot.slane %v607_v51, 2  ;;  %v591_v45 = vadd.f32 %v590_v55, %v589_v59  ;;  %v597_v63 = vadd.f32 %v596_v50, %v595_v23 }
 0x2ce   : > { %v630_v53 = vrot.slane %v629_v52, 2  ;;  %v636_v46 = vrot.slane %v635_v56, 2  ;;  %v619_v24 = vadd.f32 %v618_v31, %v617_v54  ;;  %v625_v38 = vadd.f32 %v624_v36, %v623_v1 }
 0x2cf   : > { %v603_v48 = vadd.f32 %v602_v18, %v601_v60  ;;  %v609_v35 = vadd.f32 %v608_v6, %v607_v51  ;;  %v592_v33 = vrot.slane %v591_v45, 1  ;;  %v598_v49 = vrot.slane %v597_v63, 1 }
 0x2d0   : > { %v631_v25 = vadd.f32 %v630_v53, %v629_v52  ;;  %v637_v29 = vadd.f32 %v636_v46, %v635_v56  ;;  %v620_v42 = vrot.slane %v619_v24, 1  ;;  %v626_v30 = vrot.slane %v625_v38, 1 }
 0x2d1   : > { %v604_v39 = vrot.slane %v603_v48, 1  ;;  %v610_v7 = vrot.slane %v609_v35, 1  ;;  %v2047_v44 = vadd.f32 %v592_v33, %v591_v45  ;;  %v2049_v27 = vadd.f32 %v598_v49, %v597_v63 }
 0x2d2   : > { %v632_v59 = vrot.slane %v631_v25, 1  ;;  %v638_v23 = vrot.slane %v637_v29, 1  ;;  %v2055_v60 = vadd.f32 %v620_v42, %v619_v24  ;;  %v2057_v51 = vadd.f32 %v626_v30, %v625_v38 }
 0x2d3   : > { %v2051_v4 = vadd.f32 %v604_v39, %v603_v48  ;;  %v2053_v32 = vadd.f32 %v610_v7, %v609_v35  ;;  %v640_v45 = vmul.f32 %v2020_v9, %v1694_v17  ;;  %v641_v63 = vmul.f32 %v2023_v13, %v1694_v17 }
 0x2d4   : > { %v2059_v53 = vadd.f32 %v632_v59, %v631_v25  ;;  %v2061_v46 = vadd.f32 %v638_v23, %v637_v29  ;;  %v642_v54 = vmul.f32 %v2026_v43, %v1694_v17  ;;  %v643_v1 = vmul.f32 %v2029_v3, %v1694_v17 }
 0x2d5   : > { %v668_v55 = vmul.f32 %v2020_v9, %v1731_v41  ;;  %v669_v50 = vmul.f32 %v2023_v13, %v1731_v41  ;;  %v644_v52 = vrot.slane %v640_v45, 4  ;;  %v650_v56 = vrot.slane %v641_v63, 4 }
 0x2d6   : > { %v670_v18 = vmul.f32 %v2026_v43, %v1731_v41  ;;  %v671_v6 = vmul.f32 %v2029_v3, %v1731_v41  ;;  %v656_v31 = vrot.slane %v642_v54, 4  ;;  %v662_v36 = vrot.slane %v643_v1, 4 }
 0x2d7   : > { %v672_v48 = vrot.slane %v668_v55, 4  ;;  %v678_v35 = vrot.slane %v669_v50, 4  ;;  %v645_v24 = vadd.f32 %v644_v52, %v640_v45  ;;  %v651_v17 = vadd.f32 %v650_v56, %v641_v63 }
 0x2d8   : > { %v684_v38 = vrot.slane %v670_v18, 4  ;;  %v690_v33 = vrot.slane %v671_v6, 4  ;;  %v657_v9 = vadd.f32 %v656_v31, %v642_v54  ;;  %v663_v49 = vadd.f32 %v662_v36, %v643_v1 }
 0x2d9   : > { %v673_v25 = vadd.f32 %v672_v48, %v668_v55  ;;  %v679_v13 = vadd.f32 %v678_v35, %v669_v50  ;;  %v646_v29 = vrot.slane %v645_v24, 2  ;;  %v652_v39 = vrot.slane %v651_v17, 2 }
 0x2da   : > { %v685_v7 = vadd.f32 %v684_v38, %v670_v18  ;;  %v691_v42 = vadd.f32 %v690_v33, %v671_v6  ;;  %v658_v43 = vrot.slane %v657_v9, 2  ;;  %v664_v30 = vrot.slane %v663_v49, 2 }
 0x2db   : > { %v674_v59 = vrot.slane %v673_v25, 2  ;;  %v680_v41 = vrot.slane %v679_v13, 2  ;;  %v647_v3 = vadd.f32 %v646_v29, %v645_v24  ;;  %v653_v23 = vadd.f32 %v652_v39, %v651_v17 }
 0x2dc   : > { %v686_v5 = vrot.slane %v685_v7, 2  ;;  %v692_v14 = vrot.slane %v691_v42, 2  ;;  %v659_v45 = vadd.f32 %v658_v43, %v657_v9  ;;  %v665_v63 = vadd.f32 %v664_v30, %v663_v49 }
 0x2dd   : > { %v675_v52 = vadd.f32 %v674_v59, %v673_v25  ;;  %v681_v56 = vadd.f32 %v680_v41, %v679_v13  ;;  %v648_v54 = vrot.slane %v647_v3, 1  ;;  %v654_v1 = vrot.slane %v653_v23, 1 }
 0x2de   : > { %v687_v55 = vadd.f32 %v686_v5, %v685_v7  ;;  %v693_v50 = vadd.f32 %v692_v14, %v691_v42  ;;  %v660_v31 = vrot.slane %v659_v45, 1  ;;  %v666_v36 = vrot.slane %v665_v63, 1 }
 0x2df   : > { %v676_v18 = vrot.slane %v675_v52, 1  ;;  %v682_v6 = vrot.slane %v681_v56, 1  ;;  %v649_v48 = vadd.f32 %v648_v54, %v647_v3  ;;  %v655_v35 = vadd.f32 %v654_v1, %v653_v23 }
 0x2e0   : > { %v688_v38 = vrot.slane %v687_v55, 1  ;;  %v694_v33 = vrot.slane %v693_v50, 1  ;;  %v661_v24 = vadd.f32 %v660_v31, %v659_v45  ;;  %v667_v17 = vadd.f32 %v666_v36, %v665_v63 }
 0x2e1   : > { %v677_v29 = vadd.f32 %v676_v18, %v675_v52  ;;  %v683_v39 = vadd.f32 %v682_v6, %v681_v56  ;;  %v702_v25 = vsub.f32 %v649_v48, %v2047_v44  ;;  %v703_v13 = vsub.f32 %v655_v35, %v2049_v27 }
 0x2e2   : > { %v689_v9 = vadd.f32 %v688_v38, %v687_v55  ;;  %v695_v49 = vadd.f32 %v694_v33, %v693_v50  ;;  %v704_v14 = vsub.f32 %v661_v24, %v2051_v4  ;;  %v705_v5 = vsub.f32 %v667_v17, %v2053_v32 }
 0x2e3   : > { %v710_v7 = vsub.f32 %v677_v29, %v2055_v60  ;;  %v711_v42 = vsub.f32 %v683_v39, %v2057_v51  ;;  %v565_v43 = vsel %vm533_vm10, 2.0, %v1832_v15  ;;  %v566_v30 = vsel %vm534_vm11, 2.0, %v1834_v8 }
 0x2e4   : > { %v706_v59 = vmax.f32 %v702_v25, 1e-06  ;;  %v707_v41 = vmax.f32 %v703_v13, 1e-06  ;;  %v708_v3 = vmax.f32 %v704_v14, 1e-06  ;;  %v712_v23 = vsub.f32 %v689_v9, %v2059_v53 }
 0x2e5   : > { %v713_v45 = vsub.f32 %v695_v49, %v2061_v46  ;;  %v718_v63 = vadd.f32 %v649_v48, %v2047_v44  ;;  %v709_v52 = vmax.f32 %v705_v5, 1e-06  ;;  %v714_v56 = vmax.f32 %v710_v7, 1e-06 }
 0x2e6   : > { %v715_v54 = vmax.f32 %v711_v42, 1e-06  ;;  %v719_v1 = vadd.f32 %v655_v35, %v2049_v27  ;;  %v720_v15 = vadd.f32 %v661_v24, %v2051_v4  ;;  %v721_v62 = vadd.f32 %v667_v17, %v2053_v32 }
 0x2e7   : > { %v722_v26 = vmul.f32 0.5, %v718_v63  ;;  %v781_v8 = vadd.f32 %v677_v29, %v2055_v60  ;;  %v782_v50 = vadd.f32 %v683_v39, %v2057_v51  ;;  %v783_v31 = vadd.f32 %v689_v9, %v2059_v53 }
 0x2e8   : > { %v723_v55 = vmul.f32 0.5, %v719_v1  ;;  %v784_v36 = vadd.f32 %v695_v49, %v2061_v46  ;;  %v724_v44 = vmul.f32 0.5, %v720_v15  ;;  %v725_v18 = vmul.f32 0.5, %v721_v62  ;;  %v2369_v15 = vld [vmem:[#allocation9_spill] sm:$0xff]  ;;  %v2371_v62 = vld [vmem:[#allocation11_spill] sm:$0xff] }
 0x2e9   : > { %v2361_v6 = vrot.slane %v1875_v37, %v1700_v19  ;;  %v785_v48 = vmul.f32 0.5, %v781_v8  ;;  %v2362_v4 = vrot.slane %v1875_v37, %v1703_v20  ;;  %v786_v35 = vmul.f32 0.5, %v782_v50  ;;  %v2377_v50 = vld [vmem:[#allocation3_spill] sm:$0xff] }
 0x2ea   : > { %v787_v60 = vmul.f32 0.5, %v783_v31  ;;  %v788_v38 = vmul.f32 0.5, %v784_v36  ;;  %v2363_v51 = vrot.slane %v1875_v37, %v1706_v21  ;;  %v2364_v46 = vrot.slane %v1875_v37, %v1709_v22  ;;  %v2378_v31 = vld [vmem:[#allocation4_spill] sm:$0xff]  ;;  %v2380_v36 = vld [vmem:[#allocation6_spill] sm:$0xff] }
 0x2eb   : > { %v747_v27 = vsub.f32 %v722_v26, %v2361_v6  ;;  %v748_v32 = vsub.f32 %v723_v55, %v2362_v4  ;;  %v2365_v17 = vrot.slane %v1882_v40, %v1700_v19  ;;  %v2366_v9 = vrot.slane %v1882_v40, %v1703_v20  ;;  %v2381_v4 = vld [vmem:[#allocation8_spill] sm:$0xff] }
 0x2ec   : > { %v749_v53 = vsub.f32 %v724_v44, %v2363_v51  ;;  %v750_v33 = vsub.f32 %v725_v18, %v2364_v46  ;;  %v2367_v25 = vrot.slane %v1882_v40, %v1706_v21  ;;  %v2368_v37 = vrot.slane %v1882_v40, %v1709_v22 }
 0x2ed   : > { %v774_v24 = vmul.f32 %v1884_v11, %v747_v27  ;;  %v810_v29 = vsub.f32 %v785_v48, %v2365_v17  ;;  %v776_v39 = vmul.f32 %v1892_v34, %v748_v32  ;;  %v811_v49 = vsub.f32 %v786_v35, %v2366_v9 }
 0x2ee   : > { %v812_v13 = vsub.f32 %v787_v60, %v2367_v25  ;;  %v813_v14 = vsub.f32 %v788_v38, %v2368_v37  ;;  %v778_v11 = vmul.f32 %v1894_v12, %v749_v53  ;;  %v780_v5 = vmul.f32 %v1900_v47, %v750_v33  ;;  %v2382_v60 = vld [vmem:[#allocation15_spill] sm:$0xff] }
 0x2ef   : > { %v2130_v7 = vmul.f32 %v1910_v57, %v810_v29  ;;  %v866_v34 = vmul.f32 %v1954_v28, %v706_v59  ;;  %v2134_v42 = vmul.f32 %v1920_v0, %v811_v49  ;;  %v868_v40 = vmul.f32 %v1963_v16, %v707_v41  ;;  %v2370_v59 = vld [vmem:[#allocation10_spill] sm:$0xff]  ;;  %v2374_v16 = vld [vmem:[#allocation13_spill] sm:$0xff]  ;;  %v2384_v53 = vld [vmem:[#allocation7_spill] sm:$0xff] }
 0x2f0   : > { %v2137_v63 = vmul.f32 %v1931_v58, %v812_v13  ;;  %v2140_v1 = vmul.f32 %v1939_v2, %v813_v14  ;;  %v567_v12 = vsel %vm535_vm12, 2.0, %v1836_v10  ;;  %v716_v47 = vmax.f32 %v712_v23, 1e-06  ;;  %v2372_v58 = vld [vmem:[#allocation12_spill] sm:$0xff] }
 0x2f1   : > { %v717_v57 = vmax.f32 %v713_v45, 1e-06  ;;  %v1311_v28 = vrot.slane %v2369_v15, %v1709_v22  ;;  %v870_v0 = vmul.f32 %v2370_v59, %v708_v3  ;;  %v872_v26 = vmul.f32 %v2371_v62, %v709_v52  ;;  %v2373_v2 = vld [vmem:[#allocation16_spill] sm:$0xff]  ;;  %v2376_v45 = vld [vmem:[#allocation14_spill] sm:$0xff] }
 0x2f2   : > { %1584 = vlog2.f32 %v866_v34  ;;  %v908_v8 = vmul.f32 %v2372_v58, %v714_v56  ;;  %vm927_vm1 = vcmp.ge.f32.partialorder %v2373_v2, 0.5  ;;  %vm928_vm2 = vcmp.ge.f32.partialorder %v565_v43, 0.5 }
 0x2f3   : > { %1586 = vlog2.f32 %v868_v40  ;;  %vm929_vm3 = vcmp.ge.f32.partialorder %v566_v30, 0.5  ;;  %v910_v61 = vmul.f32 %v2374_v16, %v715_v54  ;;  %vm930_vm4 = vcmp.ge.f32.partialorder %v567_v12, 0.5  ;;  %v2379_v30 = vld [vmem:[#allocation5_spill] sm:$0xff] }
 0x2f4   : > { %v2375_v10 = vmov 0.0   ;;  %v912_v55 = vmul.f32 %v2376_v45, %v716_v47  ;;  %1588 = vlog2.f32 %v870_v0  ;;  %v943_v18 = vcombine.low %v774_v24, %v776_v39 }
 0x2f5   : > { %v931_v41 = vsel %vm927_vm1, 1.0, %v2375_v10  ;;  %v932_v23 = vsel %vm928_vm2, 1.0, %v2375_v10  ;;  %v933_v3 = vsel %vm929_vm3, 1.0, %v2375_v10  ;;  %v934_v52 = vsel %vm930_vm4, 1.0, %v2375_v10 }
 0x2f6   : > { %v2159_v56 = vmul.f32 %v931_v41, %v2377_v50  ;;  %v2162_v43 = vmul.f32 %v932_v23, %v2378_v31  ;;  %v2165_v54 = vmul.f32 %v933_v3, %v2379_v30  ;;  %v2168_v44 = vmul.f32 %v934_v52, %v2380_v36 }
 0x2f7   : > { %1590 = vlog2.f32 %v872_v26  ;;  %v944_v6 = vcombine.low %v778_v11, %v780_v5  ;;  %v951_v32 = vrot.slane %v943_v18, %v2381_v4  ;;  %v914_v38 = vmul.f32 %v2382_v60, %v717_v57  ;;  %v140_v5 = vld [vmem:[%s2323_s1] ss:$8 sm:$0xf] }
 0x2f8   : > { %vm1268_vm5 = vcmp.gt.f32.partialorder %v2159_v56, 0.5  ;;  %1592 = vlog2.f32 %v908_v8  ;;  %v979_v27 = vcombine.low %v2159_v56, %v2162_v43  ;;  %v980_v48 = vcombine.low %v2165_v54, %v2168_v44 }
 0x2f9   : > { %vm1269_vm6 = vcmp.gt.f32.partialorder %v2162_v43, 0.5  ;;  %v958_v35 = vrot.slane %v944_v6, %v2381_v4  ;;  %vm1270_vm7 = vcmp.gt.f32.partialorder %v2165_v54, 0.5  ;;  %vm1271_vm8 = vcmp.gt.f32.partialorder %v2168_v44, 0.5 }
 0x2fa   : > { %1594 = vlog2.f32 %v910_v61  ;;  %v2383_v51 = vrot.slane %v2369_v15, %v1700_v19  ;;  %v2385_v46 = vrot.slane %v2384_v53, %v1700_v19  ;;  %v2386_v24 = vrot.slane %v2369_v15, %v1703_v20 }
 0x2fb   : > { %v2387_v17 = vrot.slane %v2384_v53, %v1703_v20  ;;  %v959_v39 = vcombine.low %v951_v32, %v958_v35  ;;  %v2388_v9 = vrot.slane %v2369_v15, %v1706_v21  ;;  %v2389_v49 = vrot.slane %v2384_v53, %v1706_v21 }
 0x2fc   : > { %v2187_v33 = vsel %vm1268_vm5, %v2385_v46, %v2383_v51  ;;  %v2390_v13 = vrot.slane %v2384_v53, %v1709_v22  ;;  %1596 = vlog2.f32 %v912_v55  ;;  %v987_v14 = vrot.slane %v979_v27, %v2381_v4 }
 0x2fd   : > { %v2195_v29 = vsel %vm1269_vm6, %v2387_v17, %v2386_v24  ;;  %v2203_v25 = vsel %vm1270_vm7, %v2389_v49, %v2388_v9  ;;  %v994_v11 = vrot.slane %v980_v48, %v2381_v4  ;;  %v966_v34 = vrot.slane %v959_v39, %v2381_v4 }
 0x2fe   : > { %v2208_v37 = vsel %vm1271_vm8, %v2390_v13, %v1311_v28  ;;  %v1324_v40 = vand.u32 2147483647, %v2187_v33  ;;  %v1325_v12 = vand.u32 2147483647, %v2195_v29  ;;  %v1326_v47 = vand.u32 2147483647, %v2203_v25 }
 0x2ff   : > { %1598 = vlog2.f32 %v914_v38  ;;  %v1327_v57 = vand.u32 2147483647, %v2208_v37  ;;  %v1047_v15 = vcombine.low %v2130_v7, %v2134_v42  ;;  %v1048_v28 = vcombine.low %v2137_v63, %v2140_v1  ;;  %v1585_v59 = vpop.eup %1584  ;;  %v1481_v1 = vld [vmem:[%s2323_s1 + $0x1] ss:$8 sm:$0xf] }
 0x300   : > { %v968_v0 = vsub.f32 %v140_v5, %v966_v34  ;;  %v1328_v62 = vsub.f32 0.0, %v1324_v40  ;;  %v1329_v26 = vsub.f32 0.0, %v1325_v12  ;;  %v1330_v58 = vsub.f32 0.0, %v1326_v47  ;;  %v1587_v8 = vpop.eup %1586 }
 0x301   : > { %v995_v2 = vcombine.low %v987_v14, %v994_v11  ;;  %v1331_v16 = vsub.f32 0.0, %v1327_v57  ;;  %v1055_v61 = vrot.slane %v1047_v15, %v2381_v4  ;;  %v1062_v10 = vrot.slane %v1048_v28, %v2381_v4  ;;  %v1589_v3 = vpop.eup %1588 }
 0x302   : > { %v969_v41 = vand.u32 2147483647, %v968_v0  ;;  %v1332_v23 = vmul.f32 1.442695, %v1328_v62  ;;  %v1334_v45 = vmul.f32 1.442695, %v1329_v26 }
 0x303   : > { %v1336_v55 = vmul.f32 1.442695, %v1330_v58  ;;  %v1338_v7 = vmul.f32 1.442695, %v1331_v16  ;;  %v1063_v42 = vcombine.low %v1055_v61, %v1062_v10  ;;  %v2230_v18 = vrot.slane %v995_v2, %v2381_v4 }
 0x304   : > { %v971_v63 = vmul.f32 0.5, %v969_v41  ;;  %1600 = vpow2.f32 %v1332_v23  ;;  %v1591_v52 = vpop.eup %1590  ;;  %vm1026_vm9 = vcmask 1040384   ;;  %v1500_v32 = vadd.f32 -0.5, %v969_v41 }
 0x305   : > { %1602 = vpow2.f32 %v1334_v45  ;;  %v1070_v6 = vrot.slane %v1063_v42, %v2381_v4  ;;  %v1593_v27 = vpop.eup %1592  ;;  %v874_v35 = vmul.f32 0.6931472, %v1585_v59  ;;  %vm970_vm10 = vcmp.lt.f32.partialorder %v969_v41, 1.0 }
 0x306   : > { %v972_v48 = vmul.f32 %v971_v63, %v969_v41  ;;  %1604 = vpow2.f32 %v1336_v55  ;;  %v876_v38 = vmul.f32 0.6931472, %v1587_v8  ;;  %v878_v46 = vmul.f32 0.6931472, %v1589_v3 }
 0x307   : > { %1606 = vpow2.f32 %v1338_v7  ;;  %v1072_v60 = vsub.f32 %v1481_v1, %v1070_v6  ;;  %v1595_v51 = vpop.eup %1594  ;;  %v880_v24 = vmul.f32 0.6931472, %v1591_v52  ;;  %v882_v17 = vmul.f32 5.0, %v874_v35 }
 0x308   : > { %v974_v53 = vsel %vm970_vm10, %v972_v48, %v1500_v32  ;;  %v883_v49 = vmul.f32 5.0, %v876_v38  ;;  %v1376_v14 = vsel %vm1026_vm9, %v2159_v56, 0.0  ;;  %v884_v11 = vmul.f32 5.0, %v878_v46 }
 0x309   : > { %v1004_v39 = vmul.f32 %v2230_v18, %v974_v53  ;;  %v1073_v9 = vand.u32 2147483647, %v1072_v60  ;;  %v1597_v13 = vpop.eup %1596  ;;  %v885_v5 = vmul.f32 5.0, %v880_v24  ;;  %v916_v34 = vmul.f32 0.6931472, %v1593_v27 }
 0x30a   : > { %v918_v57 = vmul.f32 0.6931472, %v1595_v51  ;;  %v1122_v0 = vcombine.low %v882_v17, %v883_v49  ;;  %v920_v10 = vmul.f32 0.6931472, %v1597_v13  ;;  %v1377_v42 = vsel %vm1026_vm9, %v2162_v43, 0.0 }
 0x30b   : > { %v1009_v40 = vrot.slane %v1004_v39, %v1700_v19  ;;  %v1013_v12 = vrot.slane %v1004_v39, %v1703_v20  ;;  %v1017_v47 = vrot.slane %v1004_v39, %v1706_v21  ;;  %v1021_v28 = vrot.slane %v1004_v39, %v1709_v22  ;;  %v1482_v49 = vld [vmem:[%s2323_s1 + $0x2] ss:$8 sm:$0xf] }
 0x30c   : > { %v1599_v15 = vpop.eup %1598  ;;  %vm1074_vm11 = vcmp.lt.f32.partialorder %v1073_v9, 1.0  ;;  %v1075_v59 = vmul.f32 0.5, %v1073_v9  ;;  %v1501_v58 = vadd.f32 -0.5, %v1073_v9  ;;  %v1123_v16 = vcombine.low %v884_v11, %v885_v5 }
 0x30d   : > { %v1027_v62 = vsel %vm1026_vm9, %v1009_v40, 0.0  ;;  %v1028_v56 = vsel %vm1026_vm9, %v1013_v12, 0.0  ;;  %v1030_v26 = vsel %vm1026_vm9, %v1017_v47, 0.0  ;;  %v1130_v61 = vrot.slane %v1122_v0, %v2381_v4 }
 0x30e   : > { %v1029_v8 = vadd.f32 %v1028_v56, %v1027_v62  ;;  %v1076_v2 = vmul.f32 %v1075_v59, %v1073_v9  ;;  %v922_v41 = vmul.f32 0.6931472, %v1599_v15  ;;  %v923_v23 = vmul.f32 5.0, %v916_v34 }
 0x30f   : > { %v924_v45 = vmul.f32 5.0, %v918_v57  ;;  %v1137_v3 = vrot.slane %v1123_v16, %v2381_v4  ;;  %v1032_v1 = vsel %vm1026_vm9, %v1021_v28, 0.0  ;;  %v925_v6 = vmul.f32 5.0, %v920_v10 }
 0x310   : > { %v1031_v55 = vadd.f32 %v1030_v26, %v1029_v8  ;;  %v1078_v7 = vsel %vm1074_vm11, %v1076_v2, %v1501_v58  ;;  %v926_v27 = vmul.f32 5.0, %v922_v41  ;;  %v1378_v47 = vadd.f32 %v1377_v42, %v1376_v14  ;;  %v1483_v14 = vld [vmem:[%s2323_s1 + $0x3] ss:$8 sm:$0xf] }
 0x311   : > { %v1601_v63 = vpop.eup %1600  ;;  %v1079_v52 = vmul.f32 %v1078_v7, %v2230_v18  ;;  %v1138_v60 = vcombine.low %v1130_v61, %v1137_v3  ;;  %v1197_v38 = vcombine.low %v923_v23, %v924_v45  ;;  %v1379_v62 = vsel %vm1026_vm9, %v2165_v54, 0.0 }
 0x312   : > { %v1603_v48 = vpop.eup %1602  ;;  %v1033_v32 = vadd.f32 %v1032_v1, %v1031_v55  ;;  %v1340_v35 = vadd.f32 1.0, %v1601_v63  ;;  %v1198_v15 = vcombine.low %v925_v6, %v926_v27  ;;  %v1380_v8 = vadd.f32 %v1379_v62, %v1378_v47 }
 0x313   : > { %v1605_v51 = vpop.eup %1604  ;;  %v1341_v53 = vadd.f32 1.0, %v1603_v48  ;;  %v1084_v46 = vrot.slane %v1079_v52, %v1700_v19  ;;  %v1088_v43 = vrot.slane %v1079_v52, %v1703_v20  ;;  %v1092_v24 = vrot.slane %v1079_v52, %v1706_v21 }
 0x314   : > { %v1607_v17 = vpop.eup %1606  ;;  %1034 = vadd.xlane.f32.xlu0 %v1033_v32  ;;  %v1342_v39 = vadd.f32 1.0, %v1605_v51  ;;  %1608 = vlog2.f32 %v1340_v35  ;;  %v1096_v9 = vrot.slane %v1079_v52, %v1709_v22  ;;  %v1145_v13 = vrot.slane %v1138_v60, %v2381_v4 }
 0x315   : > { %v1343_v11 = vadd.f32 1.0, %v1607_v17  ;;  %1610 = vlog2.f32 %v1341_v53  ;;  %v1101_v5 = vsel %vm1026_vm9, %v1084_v46, 0.0  ;;  %v1102_v34 = vsel %vm1026_vm9, %v1088_v43, 0.0 }
 0x316   : > { %1612 = vlog2.f32 %v1342_v39  ;;  %v1103_v40 = vadd.f32 %v1102_v34, %v1101_v5  ;;  %v1104_v12 = vsel %vm1026_vm9, %v1092_v24, 0.0  ;;  %v1147_v57 = vsub.f32 %v1482_v49, %v1145_v13 }
 0x317   : > { %1614 = vlog2.f32 %v1343_v11  ;;  %v1205_v28 = vrot.slane %v1197_v38, %v2381_v4  ;;  %v1106_v0 = vsel %vm1026_vm9, %v1096_v9, 0.0  ;;  %v1212_v26 = vrot.slane %v1198_v15, %v2381_v4 }
 0x318   : > { %v1105_v59 = vadd.f32 %v1104_v12, %v1103_v40  ;;  %v1148_v56 = vand.u32 2147483647, %v1147_v57  ;;  %v1381_v61 = vsel %vm1026_vm9, %v2168_v44, 0.0  ;;  %v1320_v3 = vmax.f32 %v2187_v33, 0.0 }
 0x319   : > { %v1213_v16 = vcombine.low %v1205_v28, %v1212_v26  ;;  %v1382_v54 = vadd.f32 %v1381_v61, %v1380_v8  ;;  %v1321_v63 = vmax.f32 %v2195_v29, 0.0  ;;  %v1322_v32 = vmax.f32 %v2203_v25, 0.0 }
 0x31a   : > { %v1107_v58 = vadd.f32 %v1106_v0, %v1105_v59  ;;  %v1150_v2 = vmul.f32 0.5, %v1148_v56  ;;  %v1502_v41 = vadd.f32 -0.5, %v1148_v56  ;;  %vm1149_vm12 = vcmp.lt.f32.partialorder %v1148_v56, 1.0 }
 0x31b   : > { %v1220_v23 = vrot.slane %v1213_v16, %v2381_v4  ;;  %v1323_v43 = vmax.f32 %v2208_v37, 0.0  ;;  %v1393_v26 = vsel %vm1026_vm9, %v2378_v31, 0.0 }
 0x31c   : > { %1108 = vadd.xlane.f32.xlu0 %v1107_v58  ;;  %v1151_v10 = vmul.f32 %v1150_v2, %v1148_v56  ;;  %v1392_v56 = vsel %vm1026_vm9, %v2377_v50, 0.0 }
 0x31d   : > { %v1222_v55 = vsub.f32 %v1483_v14, %v1220_v23 }
 0x31e   : > { %v1153_v45 = vsel %vm1149_vm12, %v1151_v10, %v1502_v41  ;;  %v1394_v10 = vadd.f32 %v1393_v26, %v1392_v56 }
 0x31f   : > { %v1154_v7 = vmul.f32 %v1153_v45, %v2230_v18  ;;  %v1223_v1 = vand.u32 2147483647, %v1222_v55  ;;  %v1397_v55 = vsel %vm1026_vm9, %v2380_v36, 0.0 }
 0x320   : > { %1383 = vadd.xlane.f32.xlu0 %v1382_v54 }
 0x321   : > { %v1609_v42 = vpop.eup %1608  ;;  %v1159_v44 = vrot.slane %v1154_v7, %v1700_v19  ;;  %v1163_v27 = vrot.slane %v1154_v7, %v1703_v20  ;;  %v1167_v4 = vrot.slane %v1154_v7, %v1706_v21  ;;  %v1171_v60 = vrot.slane %v1154_v7, %v1709_v22 }
 0x322   : > { %v1611_v52 = vpop.eup %1610  ;;  %v1345_v6 = vmul.f32 0.6931472, %v1609_v42  ;;  %v1225_v38 = vmul.f32 0.5, %v1223_v1  ;;  %v1503_v40 = vadd.f32 -0.5, %v1223_v1  ;;  %vm1224_vm13 = vcmp.lt.f32.partialorder %v1223_v1, 1.0 }
 0x323   : > { %v1613_v48 = vpop.eup %1612  ;;  %v1347_v35 = vmul.f32 0.6931472, %v1611_v52  ;;  %v1176_v29 = vsel %vm1026_vm9, %v1159_v44, 0.0  ;;  %v1177_v46 = vsel %vm1026_vm9, %v1163_v27, 0.0  ;;  %v1179_v25 = vsel %vm1026_vm9, %v1167_v4, 0.0 }
 0x324   : > { %v1615_v51 = vpop.eup %1614  ;;  %v1349_v33 = vmul.f32 0.6931472, %v1613_v48  ;;  %v1352_v53 = vadd.f32 %v1345_v6, %v1320_v3  ;;  %v1178_v39 = vadd.f32 %v1177_v46, %v1176_v29  ;;  %v1226_v13 = vmul.f32 %v1225_v38, %v1223_v1 }
 0x325   : > { %v1351_v24 = vmul.f32 0.6931472, %v1615_v51  ;;  %v1353_v17 = vadd.f32 %v1347_v35, %v1321_v63  ;;  %v1181_v37 = vsel %vm1026_vm9, %v1171_v60, 0.0 }
 0x326   : > { %v1354_v9 = vadd.f32 %v1349_v33, %v1322_v32  ;;  %v1356_v49 = vmul.f32 %v1352_v53, %v2377_v50  ;;  %v1180_v34 = vadd.f32 %v1179_v25, %v1178_v39  ;;  %v1228_v59 = vsel %vm1224_vm13, %v1226_v13, %v1503_v40 }
 0x327   : > { %v1355_v11 = vadd.f32 %v1351_v24, %v1323_v43  ;;  %v1357_v5 = vmul.f32 %v1353_v17, %v2378_v31  ;;  %v1229_v62 = vmul.f32 %v1228_v59, %v2230_v18  ;;  %v1395_v18 = vsel %vm1026_vm9, %v2379_v30, 0.0 }
 0x328   : > { %v1358_v12 = vmul.f32 %v1354_v9, %v2379_v30  ;;  %v1360_v47 = vsel %vm1026_vm9, %v1356_v49, 0.0  ;;  %v1182_v28 = vadd.f32 %v1181_v37, %v1180_v34  ;;  %v1396_v45 = vadd.f32 %v1395_v18, %v1394_v10 }
 0x329   : > { %v1359_v57 = vmul.f32 %v1355_v11, %v2380_v36  ;;  %v1361_v15 = vsel %vm1026_vm9, %v1357_v5, 0.0  ;;  %v1234_v2 = vrot.slane %v1229_v62, %v1700_v19  ;;  %v1238_v16 = vrot.slane %v1229_v62, %v1703_v20 }
 0x32a   : > { %v1362_v0 = vadd.f32 %v1361_v15, %v1360_v47  ;;  %v1363_v58 = vsel %vm1026_vm9, %v1358_v12, 0.0  ;;  %1183 = vadd.xlane.f32.xlu0 %v1182_v28  ;;  %v1242_v14 = vrot.slane %v1229_v62, %v1706_v21  ;;  %v1246_v41 = vrot.slane %v1229_v62, %v1709_v22 }
 0x32b   : > { %v1365_v61 = vsel %vm1026_vm9, %v1359_v57, 0.0  ;;  %v1251_v31 = vsel %vm1026_vm9, %v1234_v2, 0.0  ;;  %v1252_v23 = vsel %vm1026_vm9, %v1238_v16, 0.0  ;;  %v1398_v30 = vadd.f32 %v1397_v55, %v1396_v45 }
 0x32c   : > { %v1364_v8 = vadd.f32 %v1363_v58, %v1362_v0  ;;  %v1253_v54 = vadd.f32 %v1252_v23, %v1251_v31  ;;  %v1254_v19 = vsel %vm1026_vm9, %v1242_v14, 0.0  ;;  %v1256_v21 = vsel %vm1026_vm9, %v1246_v41, 0.0 }
 0x32e   : > { %v1366_v50 = vadd.f32 %v1365_v61, %v1364_v8  ;;  %v1255_v20 = vadd.f32 %v1254_v19, %v1253_v54  ;;  %v2391_v61 = vld [vmem:[#allocation2_spill] sm:$0xff] }
 0x32f   : > { %vm1411_vm14 = vcmp.eq.s32.totalorder %v2391_v61, 3  ;;  %vm1410_vm15 = vcmp.eq.s32.totalorder %v2391_v61, 2  ;;  %vm1409_vm0 = vcmp.eq.s32.totalorder %v2391_v61, 1  ;;  %vm1408_vm1 = vcmp.eq.s32.totalorder %v2391_v61, 0 }
 0x330   : > { %1367 = vadd.xlane.f32.xlu1 %v1366_v50  ;;  %v1257_v7 = vadd.f32 %v1256_v21, %v1255_v20 }
 0x332   : > { %1258 = vadd.xlane.f32.xlu0 %v1257_v7 }
 0x336   : > { %1399 = vadd.xlane.f32.xlu0 %v1398_v30 }
 0x39d   : > { %v1035_v22 = vpop.xlane.xlu0 %1034 }
 0x39e   : > { %v1036_v42 = vrot.slane %v1035_v22, 4 }
 0x3a0   : > { %v1037_v3 = vadd.f32 %v1036_v42, %v1035_v22 }
 0x3a2   : > { %v1038_v63 = vrot.slane %v1037_v3, 2 }
 0x3a4   : > { %v1039_v1 = vadd.f32 %v1038_v63, %v1037_v3 }
 0x3a5   : > { %v1109_v52 = vpop.xlane.xlu0 %1108 }
 0x3a6   : > { %v1110_v6 = vrot.slane %v1109_v52, 4  ;;  %v1040_v44 = vrot.slane %v1039_v1, 1 }
 0x3a8   : > { %v1111_v27 = vadd.f32 %v1110_v6, %v1109_v52  ;;  %v1041_v4 = vadd.f32 %v1040_v44, %v1039_v1 }
 0x3a9   : > { %v1384_v60 = vpop.xlane.xlu0 %1383 }
 0x3aa   : > { %v1112_v48 = vrot.slane %v1111_v27, 2  ;;  %1506 = vpush %v1041_v4  ;;  %v1385_v33 = vrot.slane %v1384_v60, 4 }
 0x3ac   : > { %v1113_v32 = vadd.f32 %v1112_v48, %v1111_v27  ;;  %v1386_v24 = vadd.f32 %v1385_v33, %v1384_v60 }
 0x3ae   : > { %v1114_v35 = vrot.slane %v1113_v32, 1  ;;  %v1387_v13 = vrot.slane %v1386_v24, 2 }
 0x3b0   : > { %v1115_v36 = vadd.f32 %v1114_v35, %v1113_v32  ;;  %v1388_v57 = vadd.f32 %v1387_v13, %v1386_v24 }
 0x3b2   : > { %1508 = vpush %v1115_v36  ;;  %v1389_v56 = vrot.slane %v1388_v57, 1 }
 0x3b3   : > { %v1184_v38 = vpop.xlane.xlu0 %1183 }
 0x3b4   : > { %v1185_v51 = vrot.slane %v1184_v38, 4  ;;  %v1390_v2 = vadd.f32 %v1389_v56, %v1388_v57 }
 0x3b6   : > { %v1186_v53 = vadd.f32 %v1185_v51, %v1184_v38 }
 0x3b8   : > { %v1187_v46 = vrot.slane %v1186_v53, 2 }
 0x3b9   : > { %v1368_v29 = vpop.xlane.xlu1 %1367 }
 0x3ba   : > { %v1369_v43 = vrot.slane %v1368_v29, 4  ;;  %v1188_v17 = vadd.f32 %v1187_v46, %v1186_v53 }
 0x3bb   : > { %v1259_v25 = vpop.xlane.xlu0 %1258 }
 0x3bc   : > { %v1370_v39 = vadd.f32 %v1369_v43, %v1368_v29  ;;  %v1189_v9 = vrot.slane %v1188_v17, 1  ;;  %v1260_v11 = vrot.slane %v1259_v25, 4 }
 0x3be   : > { %v1371_v49 = vrot.slane %v1370_v39, 2  ;;  %v1190_v5 = vadd.f32 %v1189_v9, %v1188_v17  ;;  %v1261_v34 = vadd.f32 %v1260_v11, %v1259_v25 }
 0x3bf   : > { %v1400_v12 = vpop.xlane.xlu0 %1399 }
 0x3c0   : > { %1510 = vpush %v1190_v5  ;;  %v1372_v40 = vadd.f32 %v1371_v49, %v1370_v39  ;;  %v1262_v47 = vrot.slane %v1261_v34, 2  ;;  %v1401_v37 = vrot.slane %v1400_v12, 4 }
 0x3c2   : > { %v1402_v15 = vadd.f32 %v1401_v37, %v1400_v12  ;;  %v1263_v28 = vadd.f32 %v1262_v47, %v1261_v34  ;;  %v1373_v59 = vrot.slane %v1372_v40, 1 }
 0x3c4   : > { %v1403_v0 = vrot.slane %v1402_v15, 2  ;;  %v1264_v62 = vrot.slane %v1263_v28, 1  ;;  %v1374_v8 = vadd.f32 %v1373_v59, %v1372_v40 }
 0x3c6   : > { %v1404_v26 = vadd.f32 %v1403_v0, %v1402_v15  ;;  %v1265_v58 = vadd.f32 %v1264_v62, %v1263_v28 }
 0x3c8   : > { %1512 = vpush %v1265_v58  ;;  %v1405_v16 = vrot.slane %v1404_v26, 1 }
 0x3c9   : > { %1514 = vpush %v1374_v8 }
 0x3ca   : > { %1516 = vpush %v1390_v2  ;;  %v1406_v14 = vadd.f32 %v1405_v16, %v1404_v26 }
 0x3cc   : > { %1518 = vpush %v1406_v14 }
 0x3db   : > { %s1507_s16 = spop %1506 }
 0x3e3   : > { %s1509_s17 = spop %1508 }
 0x3e4   : > { %s1117_s19 = sadd.f32 %s1509_s17, %s1507_s16 }
 0x3f1   : > { %s1511_s18 = spop %1510 }
 0x3f2   : > { %s1192_s22 = sadd.f32 %s1511_s18, %s1117_s19 }
 0x3f9   : > { %s1513_s20 = spop %1512 }
 0x3fa   : > { %s1515_s21 = spop %1514  ;;  %s1267_s24 = sadd.f32 %s1513_s20, %s1192_s22 }
 0x3fb   : > { %s1517_s23 = spop %1516  ;;  %v1416_v41 = vstv %s1515_s21 }
 0x3fc   : > { %v1414_v18 = vstv %s1517_s23  ;;  %v1418_v23 = vstv %s1267_s24 }
 0x3fd   : > { %s1519_s25 = spop %1518 }
 0x3fe   : > { %v1412_v10 = vstv %s1519_s25 }
 0x3ff   : > { %v1413_v50 = vsel %vm1411_vm14, %v1412_v10, 0.0 }
 0x400   : > { %v1415_v31 = vsel %vm1410_vm15, %v1414_v18, %v1413_v50 }
 0x401   : > { %v1417_v54 = vsel %vm1409_vm0, %v1416_v41, %v1415_v31 }
 0x402   : > { %v1419_v19 = vsel %vm1408_vm1, %v1418_v23, %v1417_v54 }
 0x403   : > { %1420 = vst [vmem:[%s138_s28] sm:$0xff] %v1419_v19 }
 0x404 PF: > { %s12_s9 = sadd.s32 1, %s1622_s9  }
 0x405   : > { %p9_p4 = scmp.ge.s32.totalorder %s12_s9, 4  }
 0x407   :  { %11 = sbr.rel (!%p9_p4) target bundleno = 1 (0x1), region = 68 }

</bundles_post_ra>
